<compile_context>
chip_gen: v7x
topology: tpu7x:2x2x1
jax: 0.10.0
libtpu: 0.0.40
codegen_flags: <defaults>
</compile_context>

<pallas_src>
import functools

import jax
import jax.numpy as jnp
from jax.experimental import pallas as pl
from jax.experimental.pallas import tpu as pltpu

F32 = jnp.float32
BF16 = jnp.bfloat16
BN_EPS = 1e-5
EXPANSION = 4


def _round_up(x, m):
    return (x + m - 1) // m * m


def _vmem_limit_bytes():
    """Generation-aware VMEM budget (v7x: 64 MiB physical; v5e/v6e: 128 MiB)."""
    try:
        cap = pltpu.get_tpu_info().vmem_capacity_bytes
    except Exception:
        cap = None
    if not cap:
        cap = 64 * 1024 * 1024  # conservative (v7x-sized) fallback
    return min(48 * 1024 * 1024, cap // 2)


_VMEM_LIMIT = _vmem_limit_bytes()
_TILE_VMEM_BUDGET = 24 * 1024 * 1024  # per-grid-step working-set target


# --------------------------------------------------------------------------
# Fused matmul kernel:
#   out = act( A @ W + bias [+ A2 @ W2 (fused downsample)] [+ residual] )
# A/W/A2/W2/residual are bf16 (MXU-native); accumulation & epilogue in f32.
# BN scales are pre-folded into W / W2 so only the bias is applied here.
# --------------------------------------------------------------------------
def _matmul_kernel(*refs, relu, has_ds, has_res):
    a_ref, w_ref, b_ref = refs[0], refs[1], refs[2]
    idx = 3
    if has_ds:
        a2_ref, w2_ref = refs[idx], refs[idx + 1]
        idx += 2
    if has_res:
        r_ref = refs[idx]
        idx += 1
    o_ref, acc_ref = refs[idx], refs[idx + 1]

    k = pl.program_id(2)

    @pl.when(k == 0)
    def _init():
        if has_ds:
            # Fused downsample branch (BN scale already folded into w2) seeds
            # the accumulator; its tiles are constant in k so they are only
            # DMA'd when (i, j) changes.
            acc_ref[...] = jnp.dot(a2_ref[...], w2_ref[...],
                                   preferred_element_type=jnp.float32)
        else:
            acc_ref[...] = jnp.zeros_like(acc_ref)

    acc_ref[...] += jnp.dot(a_ref[...], w_ref[...],
                            preferred_element_type=jnp.float32)

    @pl.when(k == pl.num_programs(2) - 1)
    def _finish():
        y = acc_ref[...] + b_ref[...]
        if has_res:
            y = y + r_ref[...].astype(jnp.float32)   # bf16 residual, f32 add
        if relu:
            y = jnp.maximum(y, 0.0)
        o_ref[...] = y.astype(o_ref.dtype)


def _pick_tiles(Mp, N, K, K2, has_ds, has_res, out_bytes):
    # N is a multiple of 128 by construction (channel-padded outputs).
    tn = N
    for cand in (512, 256, 128):
        if N % cand == 0:
            tn = cand
            break
    tm = 8
    for cand in (512, 256, 128, 64, 32, 16, 8):
        if Mp % cand == 0:
            tm = cand
            break
    # Keep >= 2 iterations on the parallel grid axes (v7x has 2 TCs/chip).
    while ((Mp // tm) * (N // tn) < 2 and tm > 8
           and (tm // 2) % 8 == 0 and Mp % (tm // 2) == 0):
        tm //= 2

    # tk: largest multiple-of-128 divisor of K that fits the VMEM budget.
    if K % 128 == 0:
        cands = [d for d in range(K, 0, -128) if K % d == 0]
    else:
        cands = [K]  # full-extent single K block (no activation padding needed)
    tk = cands[-1]
    for cand in cands:
        vmem = (2 * (tm * cand + cand * tn) * 2      # A/W bf16, double-buffered
                + 2 * tm * tn * out_bytes            # output, double-buffered
                + tm * tn * 4                        # f32 accumulator
                + 2 * tn * 4)                        # bias
        if has_ds:
            vmem += 2 * (tm * K2 + K2 * tn) * 2
        if has_res:
            vmem += 2 * tm * tn * 2
        if vmem <= _TILE_VMEM_BUDGET:
            tk = cand
            break
    return tm, tn, tk


def matmul_bn_act(a, w, bias, a2=None, w2=None, residual=None,
                  relu=False, out_dtype=BF16):
    """act(a @ w + bias [+ a2 @ w2] [+ residual]) with one fused Pallas kernel."""
    M, K = a.shape
    Kw, N = w.shape
    assert K == Kw and N % 128 == 0
    has_ds = a2 is not None
    has_res = residual is not None
    K2 = a2.shape[1] if has_ds else 0

    Mp = _round_up(M, 8)
    if Mp != M:
        a = jnp.pad(a, ((0, Mp - M), (0, 0)))
        if has_ds:
            a2 = jnp.pad(a2, ((0, Mp - M), (0, 0)))
        if has_res:
            residual = jnp.pad(residual, ((0, Mp - M), (0, 0)))

    out_bytes = jnp.dtype(out_dtype).itemsize
    tm, tn, tk = _pick_tiles(Mp, N, K, K2, has_ds, has_res, out_bytes)
    grid = (Mp // tm, N // tn, K // tk)

    bias2d = bias.astype(F32).reshape(1, N)

    inputs = [a, w, bias2d]
    in_specs = [
        pl.BlockSpec((tm, tk), lambda i, j, k: (i, k)),
        pl.BlockSpec((tk, tn), lambda i, j, k: (k, j)),
        pl.BlockSpec((1, tn), lambda i, j, k: (0, j)),
    ]
    if has_ds:
        inputs += [a2, w2]
        in_specs += [
            pl.BlockSpec((tm, K2), lambda i, j, k: (i, 0)),
            pl.BlockSpec((K2, tn), lambda i, j, k: (0, j)),
        ]
    if has_res:
        inputs.append(residual)
        in_specs.append(pl.BlockSpec((tm, tn), lambda i, j, k: (i, j)))

    flops = 2 * Mp * N * K + (2 * Mp * N * K2 if has_ds else 0)
    bytes_accessed = (Mp * K * 2 * (N // tn)       # A re-fetched per j tile
                      + K * N * 2 * (Mp // tm)     # W re-fetched per i tile
                      + N * 4 * (Mp // tm)         # bias
                      + Mp * N * out_bytes)        # output
    if has_ds:
        bytes_accessed += (Mp * K2 + K2 * N) * 2
    if has_res:
        bytes_accessed += Mp * N * 2

    out = pl.pallas_call(
        functools.partial(_matmul_kernel, relu=relu,
                          has_ds=has_ds, has_res=has_res),
        out_shape=jax.ShapeDtypeStruct((Mp, N), out_dtype),
        grid=grid,
        in_specs=in_specs,
        out_specs=pl.BlockSpec((tm, tn), lambda i, j, k: (i, j)),
        scratch_shapes=[pltpu.VMEM((tm, tn), jnp.float32)],
        compiler_params=pltpu.CompilerParams(
            dimension_semantics=("parallel", "parallel", "arbitrary"),
            vmem_limit_bytes=_VMEM_LIMIT),
        cost_estimate=pl.CostEstimate(flops=flops, transcendentals=0,
                                      bytes_accessed=bytes_accessed),
    )(*inputs)
    return out if Mp == M else out[:M]


# --------------------------------------------------------------------------
# Conv glue (layout only; all FLOPs run in the Pallas kernel above).
# --------------------------------------------------------------------------
def _im2col(x, kh, kw, stride, pad):
    # TODO(synk): patches are materialized in HBM (bf16, channel-padded); an
    # in-kernel 9-tap K-reduction would cut this ~9x (see header).
    if pad > 0:
        x = jnp.pad(x, ((0, 0), (pad, pad), (pad, pad), (0, 0)))
    B, Hp, Wp, C = x.shape
    Ho = (Hp - kh) // stride + 1
    Wo = (Wp - kw) // stride + 1
    cols = []
    for dy in range(kh):
        for dx in range(kw):
            cols.append(x[:, dy:dy + stride * Ho:stride,
                          dx:dx + stride * Wo:stride, :])
    patches = jnp.concatenate(cols, axis=-1)   # column order: (dy, dx, c_pad)
    return patches, Ho, Wo


def _bn_fold(bn):
    scale = bn['gamma'] / jnp.sqrt(bn['var'] + BN_EPS)
    bias = bn['beta'] - bn['mean'] * scale
    return scale, bias


def _prep_weight(w, groups, cin_pad, cout_pad, scale):
    """torch (Cout, Cin//groups, kh, kw) -> bf16 (kh*kw*cin_pad, cout_pad)
    matmul weight with the BN scale folded in.  Groups are laid out
    block-diagonally so a single lane-dense matmul covers all groups."""
    Cout, Cin_g, kh, kw = w.shape
    Cout_g = Cout // groups
    wfull = jnp.zeros((kh * kw, cin_pad, cout_pad), F32)
    for g in range(groups):
        wg = w[g * Cout_g:(g + 1) * Cout_g].astype(F32)      # (Cout_g,Cin_g,kh,kw)
        wg = jnp.transpose(wg, (2, 3, 1, 0)).reshape(kh * kw, Cin_g, Cout_g)
        wfull = wfull.at[:, g * Cin_g:(g + 1) * Cin_g,
                         g * Cout_g:(g + 1) * Cout_g].set(wg)
    scale_p = jnp.pad(scale.astype(F32), (0, cout_pad - Cout))
    wfull = wfull * scale_p[None, None, :]
    return wfull.reshape(kh * kw * cin_pad, cout_pad).astype(BF16)


def prepare_bottleneck(params):
    """One-time (outside jit) packing: BN fold, scale-into-weight, channel
    padding to multiples of 128, bf16 cast, block-diagonal grouped weights,
    downsample fused into conv3's weight/bias."""
    inplanes = params['conv1'].shape[1]
    width = params['conv1'].shape[0]
    cout = params['conv3'].shape[0]
    groups = params['groups']
    stride = params['stride']

    cin_pad = _round_up(inplanes, 128)
    width_pad = _round_up(width, 128)
    cout_pad = _round_up(cout, 128)

    s1, b1 = _bn_fold(params['bn1'])
    s2, b2 = _bn_fold(params['bn2'])
    s3, b3 = _bn_fold(params['bn3'])

    prep = dict(
        stride=stride, groups=groups,
        inplanes=inplanes, width=width, cout=cout,
        cin_pad=cin_pad, width_pad=width_pad, cout_pad=cout_pad,
        w1=_prep_weight(params['conv1'], 1, cin_pad, width_pad, s1),
        b1=jnp.pad(b1.astype(F32), (0, width_pad - width)),
        w2=_prep_weight(params['conv2'], groups, width_pad, width_pad, s2),
        b2=jnp.pad(b2.astype(F32), (0, width_pad - width)),
        w3=_prep_weight(params['conv3'], 1, width_pad, cout_pad, s3),
        b3=jnp.pad(b3.astype(F32), (0, cout_pad - cout)),
        wd=None)
    if params['downsample'] is not None:
        sd, bd = _bn_fold(params['downsample']['bn'])
        prep['wd'] = _prep_weight(params['downsample']['conv'], 1,
                                  cin_pad, cout_pad, sd)
        # Downsample is fused into conv3's matmul: biases are summed.
        prep['b3'] = prep['b3'] + jnp.pad(bd.astype(F32), (0, cout_pad - cout))
    else:
        assert stride == 1 and inplanes == cout, \
            "identity residual requires stride == 1 and inplanes == 4*planes"
    return prep


# --------------------------------------------------------------------------
# Bottleneck forward (NCHW in -> NCHW out, matching the PyTorch module)
# --------------------------------------------------------------------------
def bottleneck_forward(prep, x_nchw):
    x = jnp.transpose(x_nchw, (0, 2, 3, 1))                  # NCHW -> NHWC
    B, H, W, Cin = x.shape
    assert Cin == prep['inplanes']
    cin_pad = prep['cin_pad']
    xb = x.astype(BF16)
    if cin_pad != Cin:
        xb = jnp.pad(xb, ((0, 0), (0, 0), (0, 0), (0, cin_pad - Cin)))

    # conv1 (1x1) + bn1 + ReLU  (bf16 intermediate, channel-padded)
    a1 = xb.reshape(B * H * W, cin_pad)
    y1 = matmul_bn_act(a1, prep['w1'], prep['b1'], relu=True, out_dtype=BF16)
    y1 = y1.reshape(B, H, W, prep['width_pad'])

    # conv2 (3x3, grouped, stride) + bn2 + ReLU
    patches, Ho, Wo = _im2col(y1, 3, 3, prep['stride'], 1)
    a2m = patches.reshape(B * Ho * Wo, 9 * prep['width_pad'])
    y2 = matmul_bn_act(a2m, prep['w2'], prep['b2'], relu=True, out_dtype=BF16)

    # conv3 (1x1) + bn3 + (fused downsample | identity residual) + ReLU
    s = prep['stride']
    if prep['wd'] is not None:
        xs = xb[:, ::s, ::s, :] if s > 1 else xb
        a_ds = xs.reshape(B * Ho * Wo, cin_pad)
        y3 = matmul_bn_act(y2, prep['w3'], prep['b3'],
                           a2=a_ds, w2=prep['wd'], relu=True, out_dtype=F32)
    else:
        res = xb.reshape(B * Ho * Wo, cin_pad)               # bf16 residual
        y3 = matmul_bn_act(y2, prep['w3'], prep['b3'],
                           residual=res, relu=True, out_dtype=F32)

    y3 = y3.reshape(B, Ho, Wo, prep['cout_pad'])[..., :prep['cout']]
    return jnp.transpose(y3, (0, 3, 1, 2))                   # NHWC -> NCHW


# --------------------------------------------------------------------------
# Parameter construction (deterministic, synthetic) + pure-JAX f32 reference
# --------------------------------------------------------------------------
class KeyGen:
    def __init__(self, seed=0):
        self._key = jax.random.PRNGKey(seed)

    def __call__(self):
        self._key, k = jax.random.split(self._key)
        return k


def conv_init(kg, cout, cin_g, kh, kw):
    fan_out = cout * kh * kw
    std = (2.0 / fan_out) ** 0.5
    return jax.random.normal(kg(), (cout, cin_g, kh, kw), F32) * std


def bn_init(kg, c):
    return dict(gamma=jax.random.uniform(kg(), (c,), F32, 0.5, 1.5),
                beta=jax.random.normal(kg(), (c,), F32) * 0.1,
                mean=jax.random.normal(kg(), (c,), F32) * 0.1,
                var=jax.random.uniform(kg(), (c,), F32, 0.5, 1.5))


def make_bottleneck(kg, inplanes, planes, stride=1, downsample=False,
                    groups=1, base_width=64):
    width = int(planes * (base_width / 64.0)) * groups
    p = dict(
        conv1=conv_init(kg, width, inplanes, 1, 1), bn1=bn_init(kg, width),
        conv2=conv_init(kg, width, width // groups, 3, 3), bn2=bn_init(kg, width),
        conv3=conv_init(kg, planes * EXPANSION, width, 1, 1),
        bn3=bn_init(kg, planes * EXPANSION),
        stride=stride, groups=groups, downsample=None)
    if downsample:
        p['downsample'] = dict(
            conv=conv_init(kg, planes * EXPANSION, inplanes, 1, 1),
            bn=bn_init(kg, planes * EXPANSION), stride=stride)
    return p


def _ref_conv(x, w_torch, stride=1, pad=0, groups=1):
    return jax.lax.conv_general_dilated(
        x, jnp.transpose(w_torch, (2, 3, 1, 0)),
        window_strides=(stride, stride),
        padding=((pad, pad), (pad, pad)),
        dimension_numbers=('NHWC', 'HWIO', 'NHWC'),
        feature_group_count=groups)


def _ref_bn(x, bn):
    return (x - bn['mean']) / jnp.sqrt(bn['var'] + BN_EPS) * bn['gamma'] + bn['beta']


def bottleneck_reference(params, x_nchw):
    x = jnp.transpose(x_nchw, (0, 2, 3, 1)).astype(F32)
    out = jax.nn.relu(_ref_bn(_ref_conv(x, params['conv1']), params['bn1']))
    out = jax.nn.relu(_ref_bn(_ref_conv(out, params['conv2'],
                                        stride=params['stride'], pad=1,
                                        groups=params['groups']), params['bn2']))
    out = _ref_bn(_ref_conv(out, params['conv3']), params['bn3'])
    if params['downsample'] is not None:
        d = params['downsample']
        identity = _ref_bn(_ref_conv(x, d['conv'], stride=d['stride']), d['bn'])
    else:
        identity = x
    out = jax.nn.relu(out + identity)
    return jnp.transpose(out, (0, 3, 1, 2))


if __name__ == "__main__":
    kg = KeyGen(0)

    # Block 1: downsample path (inplanes=64 -> 128, stride 2, grouped 3x3).
    p1 = make_bottleneck(kg, 64, 32, stride=2, downsample=True,
                         groups=2, base_width=64)
    # Block 2: standard identity-residual path (inplanes == 4*planes).
    p2 = make_bottleneck(kg, 128, 32, stride=1, downsample=False,
                         groups=1, base_width=64)

    prep1 = prepare_bottleneck(p1)   # one-time weight packing, outside jit
    prep2 = prepare_bottleneck(p2)

    x = jax.random.normal(jax.random.PRNGKey(0), (2, 64, 16, 16), F32)

    @jax.jit
    def fwd(x):
        return bottleneck_forward(prep2, bottleneck_forward(prep1, x))

    out = jax.block_until_ready(fwd(x))
    assert out.shape == (2, 128, 8, 8)
    assert out.dtype == jnp.float32
    assert bool(jnp.all(jnp.isfinite(out)))

    # Cross-check against a pure-JAX reference (tolerance set for bf16 MXU).
    ref = bottleneck_reference(p2, bottleneck_reference(p1, x))
    err = jnp.max(jnp.abs(out - ref)) / (jnp.max(jnp.abs(ref)) + 1e-6)
    assert float(err) < 5e-2, f"max relative error too large: {float(err)}"

    print("KERNEL_OK")
</pallas_src>

<mosaic_0001>
module attributes {stable_mosaic.version = 11 : i64} {
  func.func @_matmul_kernel(%arg0: i32, %arg1: i32, %arg2: i32, %arg3: memref<256x128xbf16, #tpu.memory_space<vmem>>, %arg4: memref<128x128xbf16, #tpu.memory_space<vmem>>, %arg5: memref<1x128xf32, #tpu.memory_space<vmem>>, %arg6: memref<256x128xbf16, #tpu.memory_space<vmem>>, %arg7: memref<256x128xf32, #tpu.memory_space<vmem>>) attributes {dimension_semantics = [#tpu.dimension_semantics<parallel>, #tpu.dimension_semantics<parallel>, #tpu.dimension_semantics<arbitrary>], iteration_bounds = array<i64: 2, 1, 1>, scalar_prefetch = 0 : i64, scratch_operands = 1 : i64, tpu.core_type = #tpu.core_type<tc>, window_params = [{transform_indices = @transform_0, window_bounds = array<i64: 256, 128>}, {transform_indices = @transform_1, window_bounds = array<i64: 128, 128>}, {transform_indices = @transform_2, window_bounds = array<i64: 1, 128>}, {transform_indices = @transform_3, window_bounds = array<i64: 256, 128>}]} {
    %c0_i32 = arith.constant 0 : i32
    %0 = arith.cmpi eq, %arg2, %c0_i32 : i32
    %1 = arith.extui %0 : i1 to i32
    %c0_i32_0 = arith.constant 0 : i32
    %2 = arith.cmpi ne, %1, %c0_i32_0 : i32
    scf.if %2 {
      %cst_10 = arith.constant 0.000000e+00 : f32
      %12 = vector.broadcast %cst_10 : f32 to vector<256x128xf32>
      %c0_11 = arith.constant 0 : index
      %c0_12 = arith.constant 0 : index
      %13 = vector.load %arg7[%c0_11, %c0_12] : memref<256x128xf32, #tpu.memory_space<vmem>>, vector<256x128xf32>
      tpu.vector_store %arg7[%c0_11, %c0_12], %12 {strides = array<i32>} : memref<256x128xf32, #tpu.memory_space<vmem>>, vector<256x128xf32>,
    } else {
    }
    %c0 = arith.constant 0 : index
    %c0_1 = arith.constant 0 : index
    %3 = vector.load %arg7[%c0, %c0_1] : memref<256x128xf32, #tpu.memory_space<vmem>>, vector<256x128xf32>
    %c0_2 = arith.constant 0 : index
    %c0_3 = arith.constant 0 : index
    %4 = vector.load %arg3[%c0_2, %c0_3] : memref<256x128xbf16, #tpu.memory_space<vmem>>, vector<256x128xbf16>
    %c0_4 = arith.constant 0 : index
    %c0_5 = arith.constant 0 : index
    %5 = vector.load %arg4[%c0_4, %c0_5] : memref<128x128xbf16, #tpu.memory_space<vmem>>, vector<128x128xbf16>
    %cst = arith.constant dense<0.000000e+00> : vector<256x128xf32>
    %6 = tpu.matmul %4, %5, %cst {dimension_numbers = #tpu.dot_dimension_numbers<[1], [0], [0], [1], [0, 0, 1, 1], [], []>} : vector<256x128xbf16>, vector<128x128xbf16>, vector<256x128xf32> -> vector<256x128xf32>
    %7 = arith.addf %3, %6 : vector<256x128xf32>
    %c0_6 = arith.constant 0 : index
    %c0_7 = arith.constant 0 : index
    %8 = vector.load %arg7[%c0_6, %c0_7] : memref<256x128xf32, #tpu.memory_space<vmem>>, vector<256x128xf32>
    tpu.vector_store %arg7[%c0_6, %c0_7], %7 {strides = array<i32>} : memref<256x128xf32, #tpu.memory_space<vmem>>, vector<256x128xf32>,
    %c0_i32_8 = arith.constant 0 : i32
    %9 = arith.cmpi eq, %arg2, %c0_i32_8 : i32
    %10 = arith.extui %9 : i1 to i32
    %c0_i32_9 = arith.constant 0 : i32
    %11 = arith.cmpi ne, %10, %c0_i32_9 : i32
    scf.if %11 {
      %c0_10 = arith.constant 0 : index
      %c0_11 = arith.constant 0 : index
      %12 = vector.load %arg7[%c0_10, %c0_11] : memref<256x128xf32, #tpu.memory_space<vmem>>, vector<256x128xf32>
      %c0_12 = arith.constant 0 : index
      %c0_13 = arith.constant 0 : index
      %13 = vector.load %arg5[%c0_12, %c0_13] : memref<1x128xf32, #tpu.memory_space<vmem>>, vector<1x128xf32>
      %14 = vector.broadcast %13 : vector<1x128xf32> to vector<256x128xf32>
      %15 = arith.addf %12, %14 : vector<256x128xf32>
      %cst_14 = arith.constant 0.000000e+00 : f32
      %16 = vector.broadcast %cst_14 : f32 to vector<256x128xf32>
      %17 = arith.maximumf %15, %16 : vector<256x128xf32>
      %18 = arith.truncf %17 : vector<256x128xf32> to vector<256x128xbf16>
      %c0_15 = arith.constant 0 : index
      %c0_16 = arith.constant 0 : index
      %19 = vector.load %arg6[%c0_15, %c0_16] : memref<256x128xbf16, #tpu.memory_space<vmem>>, vector<256x128xbf16>
      tpu.vector_store %arg6[%c0_15, %c0_16], %18 {strides = array<i32>} : memref<256x128xbf16, #tpu.memory_space<vmem>>, vector<256x128xbf16>,
    } else {
    }
    return
  }
  func.func @transform_0(%arg0: i32, %arg1: i32, %arg2: i32) -> (i32, i32) {
    %c0_i32 = arith.constant 0 : i32
    return %arg0, %arg2 : i32, i32
  }
  func.func @transform_1(%arg0: i32, %arg1: i32, %arg2: i32) -> (i32, i32) {
    %c0_i32 = arith.constant 0 : i32
    return %arg2, %arg1 : i32, i32
  }
  func.func @transform_2(%arg0: i32, %arg1: i32, %arg2: i32) -> (i32, i32) {
    %c0_i32 = arith.constant 0 : i32
    %c0_i32_0 = arith.constant 0 : i32
    return %c0_i32, %arg1 : i32, i32
  }
  func.func @transform_3(%arg0: i32, %arg1: i32, %arg2: i32) -> (i32, i32) {
    %c0_i32 = arith.constant 0 : i32
    return %arg0, %arg1 : i32, i32
  }
}

module attributes {stable_mosaic.version = 11 : i64} {
  func.func @_matmul_kernel(%arg0: i32, %arg1: i32, %arg2: i32, %arg3: memref<64x1152xbf16, #tpu.memory_space<vmem>>, %arg4: memref<1152x128xbf16, #tpu.memory_space<vmem>>, %arg5: memref<1x128xf32, #tpu.memory_space<vmem>>, %arg6: memref<64x128xbf16, #tpu.memory_space<vmem>>, %arg7: memref<64x128xf32, #tpu.memory_space<vmem>>) attributes {dimension_semantics = [#tpu.dimension_semantics<parallel>, #tpu.dimension_semantics<parallel>, #tpu.dimension_semantics<arbitrary>], iteration_bounds = array<i64: 2, 1, 1>, scalar_prefetch = 0 : i64, scratch_operands = 1 : i64, tpu.core_type = #tpu.core_type<tc>, window_params = [{transform_indices = @transform_0, window_bounds = array<i64: 64, 1152>}, {transform_indices = @transform_1, window_bounds = array<i64: 1152, 128>}, {transform_indices = @transform_2, window_bounds = array<i64: 1, 128>}, {transform_indices = @transform_3, window_bounds = array<i64: 64, 128>}]} {
    %c0_i32 = arith.constant 0 : i32
    %0 = arith.cmpi eq, %arg2, %c0_i32 : i32
    %1 = arith.extui %0 : i1 to i32
    %c0_i32_0 = arith.constant 0 : i32
    %2 = arith.cmpi ne, %1, %c0_i32_0 : i32
    scf.if %2 {
      %cst_10 = arith.constant 0.000000e+00 : f32
      %12 = vector.broadcast %cst_10 : f32 to vector<64x128xf32>
      %c0_11 = arith.constant 0 : index
      %c0_12 = arith.constant 0 : index
      %13 = vector.load %arg7[%c0_11, %c0_12] : memref<64x128xf32, #tpu.memory_space<vmem>>, vector<64x128xf32>
      tpu.vector_store %arg7[%c0_11, %c0_12], %12 {strides = array<i32>} : memref<64x128xf32, #tpu.memory_space<vmem>>, vector<64x128xf32>,
    } else {
    }
    %c0 = arith.constant 0 : index
    %c0_1 = arith.constant 0 : index
    %3 = vector.load %arg7[%c0, %c0_1] : memref<64x128xf32, #tpu.memory_space<vmem>>, vector<64x128xf32>
    %c0_2 = arith.constant 0 : index
    %c0_3 = arith.constant 0 : index
    %4 = vector.load %arg3[%c0_2, %c0_3] : memref<64x1152xbf16, #tpu.memory_space<vmem>>, vector<64x1152xbf16>
    %c0_4 = arith.constant 0 : index
    %c0_5 = arith.constant 0 : index
    %5 = vector.load %arg4[%c0_4, %c0_5] : memref<1152x128xbf16, #tpu.memory_space<vmem>>, vector<1152x128xbf16>
    %cst = arith.constant dense<0.000000e+00> : vector<64x128xf32>
    %6 = tpu.matmul %4, %5, %cst {dimension_numbers = #tpu.dot_dimension_numbers<[1], [0], [0], [1], [0, 0, 1, 1], [], []>} : vector<64x1152xbf16>, vector<1152x128xbf16>, vector<64x128xf32> -> vector<64x128xf32>
    %7 = arith.addf %3, %6 : vector<64x128xf32>
    %c0_6 = arith.constant 0 : index
    %c0_7 = arith.constant 0 : index
    %8 = vector.load %arg7[%c0_6, %c0_7] : memref<64x128xf32, #tpu.memory_space<vmem>>, vector<64x128xf32>
    tpu.vector_store %arg7[%c0_6, %c0_7], %7 {strides = array<i32>} : memref<64x128xf32, #tpu.memory_space<vmem>>, vector<64x128xf32>,
    %c0_i32_8 = arith.constant 0 : i32
    %9 = arith.cmpi eq, %arg2, %c0_i32_8 : i32
    %10 = arith.extui %9 : i1 to i32
    %c0_i32_9 = arith.constant 0 : i32
    %11 = arith.cmpi ne, %10, %c0_i32_9 : i32
    scf.if %11 {
      %c0_10 = arith.constant 0 : index
      %c0_11 = arith.constant 0 : index
      %12 = vector.load %arg7[%c0_10, %c0_11] : memref<64x128xf32, #tpu.memory_space<vmem>>, vector<64x128xf32>
      %c0_12 = arith.constant 0 : index
      %c0_13 = arith.constant 0 : index
      %13 = vector.load %arg5[%c0_12, %c0_13] : memref<1x128xf32, #tpu.memory_space<vmem>>, vector<1x128xf32>
      %14 = vector.broadcast %13 : vector<1x128xf32> to vector<64x128xf32>
      %15 = arith.addf %12, %14 : vector<64x128xf32>
      %cst_14 = arith.constant 0.000000e+00 : f32
      %16 = vector.broadcast %cst_14 : f32 to vector<64x128xf32>
      %17 = arith.maximumf %15, %16 : vector<64x128xf32>
      %18 = arith.truncf %17 : vector<64x128xf32> to vector<64x128xbf16>
      %c0_15 = arith.constant 0 : index
      %c0_16 = arith.constant 0 : index
      %19 = vector.load %arg6[%c0_15, %c0_16] : memref<64x128xbf16, #tpu.memory_space<vmem>>, vector<64x128xbf16>
      tpu.vector_store %arg6[%c0_15, %c0_16], %18 {strides = array<i32>} : memref<64x128xbf16, #tpu.memory_space<vmem>>, vector<64x128xbf16>,
    } else {
    }
    return
  }
  func.func @transform_0(%arg0: i32, %arg1: i32, %arg2: i32) -> (i32, i32) {
    %c0_i32 = arith.constant 0 : i32
    return %arg0, %arg2 : i32, i32
  }
  func.func @transform_1(%arg0: i32, %arg1: i32, %arg2: i32) -> (i32, i32) {
    %c0_i32 = arith.constant 0 : i32
    return %arg2, %arg1 : i32, i32
  }
  func.func @transform_2(%arg0: i32, %arg1: i32, %arg2: i32) -> (i32, i32) {
    %c0_i32 = arith.constant 0 : i32
    %c0_i32_0 = arith.constant 0 : i32
    return %c0_i32, %arg1 : i32, i32
  }
  func.func @transform_3(%arg0: i32, %arg1: i32, %arg2: i32) -> (i32, i32) {
    %c0_i32 = arith.constant 0 : i32
    return %arg0, %arg1 : i32, i32
  }
}

module attributes {stable_mosaic.version = 11 : i64} {
  func.func @_matmul_kernel(%arg0: i32, %arg1: i32, %arg2: i32, %arg3: memref<64x128xbf16, #tpu.memory_space<vmem>>, %arg4: memref<128x128xbf16, #tpu.memory_space<vmem>>, %arg5: memref<1x128xf32, #tpu.memory_space<vmem>>, %arg6: memref<64x128xbf16, #tpu.memory_space<vmem>>, %arg7: memref<128x128xbf16, #tpu.memory_space<vmem>>, %arg8: memref<64x128xf32, #tpu.memory_space<vmem>>, %arg9: memref<64x128xf32, #tpu.memory_space<vmem>>) attributes {dimension_semantics = [#tpu.dimension_semantics<parallel>, #tpu.dimension_semantics<parallel>, #tpu.dimension_semantics<arbitrary>], iteration_bounds = array<i64: 2, 1, 1>, scalar_prefetch = 0 : i64, scratch_operands = 1 : i64, tpu.core_type = #tpu.core_type<tc>, window_params = [{transform_indices = @transform_0, window_bounds = array<i64: 64, 128>}, {transform_indices = @transform_1, window_bounds = array<i64: 128, 128>}, {transform_indices = @transform_2, window_bounds = array<i64: 1, 128>}, {transform_indices = @transform_3, window_bounds = array<i64: 64, 128>}, {transform_indices = @transform_4, window_bounds = array<i64: 128, 128>}, {transform_indices = @transform_5, window_bounds = array<i64: 64, 128>}]} {
    %c0_i32 = arith.constant 0 : i32
    %0 = arith.cmpi eq, %arg2, %c0_i32 : i32
    %1 = arith.extui %0 : i1 to i32
    %c0_i32_0 = arith.constant 0 : i32
    %2 = arith.cmpi ne, %1, %c0_i32_0 : i32
    scf.if %2 {
      %c0_10 = arith.constant 0 : index
      %c0_11 = arith.constant 0 : index
      %12 = vector.load %arg6[%c0_10, %c0_11] : memref<64x128xbf16, #tpu.memory_space<vmem>>, vector<64x128xbf16>
      %c0_12 = arith.constant 0 : index
      %c0_13 = arith.constant 0 : index
      %13 = vector.load %arg7[%c0_12, %c0_13] : memref<128x128xbf16, #tpu.memory_space<vmem>>, vector<128x128xbf16>
      %cst_14 = arith.constant dense<0.000000e+00> : vector<64x128xf32>
      %14 = tpu.matmul %12, %13, %cst_14 {dimension_numbers = #tpu.dot_dimension_numbers<[1], [0], [0], [1], [0, 0, 1, 1], [], []>} : vector<64x128xbf16>, vector<128x128xbf16>, vector<64x128xf32> -> vector<64x128xf32>
      %c0_15 = arith.constant 0 : index
      %c0_16 = arith.constant 0 : index
      %15 = vector.load %arg9[%c0_15, %c0_16] : memref<64x128xf32, #tpu.memory_space<vmem>>, vector<64x128xf32>
      tpu.vector_store %arg9[%c0_15, %c0_16], %14 {strides = array<i32>} : memref<64x128xf32, #tpu.memory_space<vmem>>, vector<64x128xf32>,
    } else {
    }
    %c0 = arith.constant 0 : index
    %c0_1 = arith.constant 0 : index
    %3 = vector.load %arg9[%c0, %c0_1] : memref<64x128xf32, #tpu.memory_space<vmem>>, vector<64x128xf32>
    %c0_2 = arith.constant 0 : index
    %c0_3 = arith.constant 0 : index
    %4 = vector.load %arg3[%c0_2, %c0_3] : memref<64x128xbf16, #tpu.memory_space<vmem>>, vector<64x128xbf16>
    %c0_4 = arith.constant 0 : index
    %c0_5 = arith.constant 0 : index
    %5 = vector.load %arg4[%c0_4, %c0_5] : memref<128x128xbf16, #tpu.memory_space<vmem>>, vector<128x128xbf16>
    %cst = arith.constant dense<0.000000e+00> : vector<64x128xf32>
    %6 = tpu.matmul %4, %5, %cst {dimension_numbers = #tpu.dot_dimension_numbers<[1], [0], [0], [1], [0, 0, 1, 1], [], []>} : vector<64x128xbf16>, vector<128x128xbf16>, vector<64x128xf32> -> vector<64x128xf32>
    %7 = arith.addf %3, %6 : vector<64x128xf32>
    %c0_6 = arith.constant 0 : index
    %c0_7 = arith.constant 0 : index
    %8 = vector.load %arg9[%c0_6, %c0_7] : memref<64x128xf32, #tpu.memory_space<vmem>>, vector<64x128xf32>
    tpu.vector_store %arg9[%c0_6, %c0_7], %7 {strides = array<i32>} : memref<64x128xf32, #tpu.memory_space<vmem>>, vector<64x128xf32>,
    %c0_i32_8 = arith.constant 0 : i32
    %9 = arith.cmpi eq, %arg2, %c0_i32_8 : i32
    %10 = arith.extui %9 : i1 to i32
    %c0_i32_9 = arith.constant 0 : i32
    %11 = arith.cmpi ne, %10, %c0_i32_9 : i32
    scf.if %11 {
      %c0_10 = arith.constant 0 : index
      %c0_11 = arith.constant 0 : index
      %12 = vector.load %arg9[%c0_10, %c0_11] : memref<64x128xf32, #tpu.memory_space<vmem>>, vector<64x128xf32>
      %c0_12 = arith.constant 0 : index
      %c0_13 = arith.constant 0 : index
      %13 = vector.load %arg5[%c0_12, %c0_13] : memref<1x128xf32, #tpu.memory_space<vmem>>, vector<1x128xf32>
      %14 = vector.broadcast %13 : vector<1x128xf32> to vector<64x128xf32>
      %15 = arith.addf %12, %14 : vector<64x128xf32>
      %cst_14 = arith.constant 0.000000e+00 : f32
      %16 = vector.broadcast %cst_14 : f32 to vector<64x128xf32>
      %17 = arith.maximumf %15, %16 : vector<64x128xf32>
      %c0_15 = arith.constant 0 : index
      %c0_16 = arith.constant 0 : index
      %18 = vector.load %arg8[%c0_15, %c0_16] : memref<64x128xf32, #tpu.memory_space<vmem>>, vector<64x128xf32>
      tpu.vector_store %arg8[%c0_15, %c0_16], %17 {strides = array<i32>} : memref<64x128xf32, #tpu.memory_space<vmem>>, vector<64x128xf32>,
    } else {
    }
    return
  }
  func.func @transform_0(%arg0: i32, %arg1: i32, %arg2: i32) -> (i32, i32) {
    %c0_i32 = arith.constant 0 : i32
    return %arg0, %arg2 : i32, i32
  }
  func.func @transform_1(%arg0: i32, %arg1: i32, %arg2: i32) -> (i32, i32) {
    %c0_i32 = arith.constant 0 : i32
    return %arg2, %arg1 : i32, i32
  }
  func.func @transform_2(%arg0: i32, %arg1: i32, %arg2: i32) -> (i32, i32) {
    %c0_i32 = arith.constant 0 : i32
    %c0_i32_0 = arith.constant 0 : i32
    return %c0_i32, %arg1 : i32, i32
  }
  func.func @transform_3(%arg0: i32, %arg1: i32, %arg2: i32) -> (i32, i32) {
    %c0_i32 = arith.constant 0 : i32
    %c0_i32_0 = arith.constant 0 : i32
    return %arg0, %c0_i32 : i32, i32
  }
  func.func @transform_4(%arg0: i32, %arg1: i32, %arg2: i32) -> (i32, i32) {
    %c0_i32 = arith.constant 0 : i32
    %c0_i32_0 = arith.constant 0 : i32
    return %c0_i32, %arg1 : i32, i32
  }
  func.func @transform_5(%arg0: i32, %arg1: i32, %arg2: i32) -> (i32, i32) {
    %c0_i32 = arith.constant 0 : i32
    return %arg0, %arg1 : i32, i32
  }
}

module attributes {stable_mosaic.version = 11 : i64} {
  func.func @_matmul_kernel(%arg0: i32, %arg1: i32, %arg2: i32, %arg3: memref<64x128xbf16, #tpu.memory_space<vmem>>, %arg4: memref<128x128xbf16, #tpu.memory_space<vmem>>, %arg5: memref<1x128xf32, #tpu.memory_space<vmem>>, %arg6: memref<64x128xbf16, #tpu.memory_space<vmem>>, %arg7: memref<64x128xf32, #tpu.memory_space<vmem>>) attributes {dimension_semantics = [#tpu.dimension_semantics<parallel>, #tpu.dimension_semantics<parallel>, #tpu.dimension_semantics<arbitrary>], iteration_bounds = array<i64: 2, 1, 1>, scalar_prefetch = 0 : i64, scratch_operands = 1 : i64, tpu.core_type = #tpu.core_type<tc>, window_params = [{transform_indices = @transform_0, window_bounds = array<i64: 64, 128>}, {transform_indices = @transform_1, window_bounds = array<i64: 128, 128>}, {transform_indices = @transform_2, window_bounds = array<i64: 1, 128>}, {transform_indices = @transform_3, window_bounds = array<i64: 64, 128>}]} {
    %c0_i32 = arith.constant 0 : i32
    %0 = arith.cmpi eq, %arg2, %c0_i32 : i32
    %1 = arith.extui %0 : i1 to i32
    %c0_i32_0 = arith.constant 0 : i32
    %2 = arith.cmpi ne, %1, %c0_i32_0 : i32
    scf.if %2 {
      %cst_10 = arith.constant 0.000000e+00 : f32
      %12 = vector.broadcast %cst_10 : f32 to vector<64x128xf32>
      %c0_11 = arith.constant 0 : index
      %c0_12 = arith.constant 0 : index
      %13 = vector.load %arg7[%c0_11, %c0_12] : memref<64x128xf32, #tpu.memory_space<vmem>>, vector<64x128xf32>
      tpu.vector_store %arg7[%c0_11, %c0_12], %12 {strides = array<i32>} : memref<64x128xf32, #tpu.memory_space<vmem>>, vector<64x128xf32>,
    } else {
    }
    %c0 = arith.constant 0 : index
    %c0_1 = arith.constant 0 : index
    %3 = vector.load %arg7[%c0, %c0_1] : memref<64x128xf32, #tpu.memory_space<vmem>>, vector<64x128xf32>
    %c0_2 = arith.constant 0 : index
    %c0_3 = arith.constant 0 : index
    %4 = vector.load %arg3[%c0_2, %c0_3] : memref<64x128xbf16, #tpu.memory_space<vmem>>, vector<64x128xbf16>
    %c0_4 = arith.constant 0 : index
    %c0_5 = arith.constant 0 : index
    %5 = vector.load %arg4[%c0_4, %c0_5] : memref<128x128xbf16, #tpu.memory_space<vmem>>, vector<128x128xbf16>
    %cst = arith.constant dense<0.000000e+00> : vector<64x128xf32>
    %6 = tpu.matmul %4, %5, %cst {dimension_numbers = #tpu.dot_dimension_numbers<[1], [0], [0], [1], [0, 0, 1, 1], [], []>} : vector<64x128xbf16>, vector<128x128xbf16>, vector<64x128xf32> -> vector<64x128xf32>
    %7 = arith.addf %3, %6 : vector<64x128xf32>
    %c0_6 = arith.constant 0 : index
    %c0_7 = arith.constant 0 : index
    %8 = vector.load %arg7[%c0_6, %c0_7] : memref<64x128xf32, #tpu.memory_space<vmem>>, vector<64x128xf32>
    tpu.vector_store %arg7[%c0_6, %c0_7], %7 {strides = array<i32>} : memref<64x128xf32, #tpu.memory_space<vmem>>, vector<64x128xf32>,
    %c0_i32_8 = arith.constant 0 : i32
    %9 = arith.cmpi eq, %arg2, %c0_i32_8 : i32
    %10 = arith.extui %9 : i1 to i32
    %c0_i32_9 = arith.constant 0 : i32
    %11 = arith.cmpi ne, %10, %c0_i32_9 : i32
    scf.if %11 {
      %c0_10 = arith.constant 0 : index
      %c0_11 = arith.constant 0 : index
      %12 = vector.load %arg7[%c0_10, %c0_11] : memref<64x128xf32, #tpu.memory_space<vmem>>, vector<64x128xf32>
      %c0_12 = arith.constant 0 : index
      %c0_13 = arith.constant 0 : index
      %13 = vector.load %arg5[%c0_12, %c0_13] : memref<1x128xf32, #tpu.memory_space<vmem>>, vector<1x128xf32>
      %14 = vector.broadcast %13 : vector<1x128xf32> to vector<64x128xf32>
      %15 = arith.addf %12, %14 : vector<64x128xf32>
      %cst_14 = arith.constant 0.000000e+00 : f32
      %16 = vector.broadcast %cst_14 : f32 to vector<64x128xf32>
      %17 = arith.maximumf %15, %16 : vector<64x128xf32>
      %18 = arith.truncf %17 : vector<64x128xf32> to vector<64x128xbf16>
      %c0_15 = arith.constant 0 : index
      %c0_16 = arith.constant 0 : index
      %19 = vector.load %arg6[%c0_15, %c0_16] : memref<64x128xbf16, #tpu.memory_space<vmem>>, vector<64x128xbf16>
      tpu.vector_store %arg6[%c0_15, %c0_16], %18 {strides = array<i32>} : memref<64x128xbf16, #tpu.memory_space<vmem>>, vector<64x128xbf16>,
    } else {
    }
    return
  }
  func.func @transform_0(%arg0: i32, %arg1: i32, %arg2: i32) -> (i32, i32) {
    %c0_i32 = arith.constant 0 : i32
    return %arg0, %arg2 : i32, i32
  }
  func.func @transform_1(%arg0: i32, %arg1: i32, %arg2: i32) -> (i32, i32) {
    %c0_i32 = arith.constant 0 : i32
    return %arg2, %arg1 : i32, i32
  }
  func.func @transform_2(%arg0: i32, %arg1: i32, %arg2: i32) -> (i32, i32) {
    %c0_i32 = arith.constant 0 : i32
    %c0_i32_0 = arith.constant 0 : i32
    return %c0_i32, %arg1 : i32, i32
  }
  func.func @transform_3(%arg0: i32, %arg1: i32, %arg2: i32) -> (i32, i32) {
    %c0_i32 = arith.constant 0 : i32
    return %arg0, %arg1 : i32, i32
  }
}

module attributes {stable_mosaic.version = 11 : i64} {
  func.func @_matmul_kernel(%arg0: i32, %arg1: i32, %arg2: i32, %arg3: memref<64x128xbf16, #tpu.memory_space<vmem>>, %arg4: memref<128x128xbf16, #tpu.memory_space<vmem>>, %arg5: memref<1x128xf32, #tpu.memory_space<vmem>>, %arg6: memref<64x128xbf16, #tpu.memory_space<vmem>>, %arg7: memref<64x128xf32, #tpu.memory_space<vmem>>, %arg8: memref<64x128xf32, #tpu.memory_space<vmem>>) attributes {dimension_semantics = [#tpu.dimension_semantics<parallel>, #tpu.dimension_semantics<parallel>, #tpu.dimension_semantics<arbitrary>], iteration_bounds = array<i64: 2, 1, 1>, scalar_prefetch = 0 : i64, scratch_operands = 1 : i64, tpu.core_type = #tpu.core_type<tc>, window_params = [{transform_indices = @transform_0, window_bounds = array<i64: 64, 128>}, {transform_indices = @transform_1, window_bounds = array<i64: 128, 128>}, {transform_indices = @transform_2, window_bounds = array<i64: 1, 128>}, {transform_indices = @transform_3, window_bounds = array<i64: 64, 128>}, {transform_indices = @transform_4, window_bounds = array<i64: 64, 128>}]} {
    %c0_i32 = arith.constant 0 : i32
    %0 = arith.cmpi eq, %arg2, %c0_i32 : i32
    %1 = arith.extui %0 : i1 to i32
    %c0_i32_0 = arith.constant 0 : i32
    %2 = arith.cmpi ne, %1, %c0_i32_0 : i32
    scf.if %2 {
      %cst_10 = arith.constant 0.000000e+00 : f32
      %12 = vector.broadcast %cst_10 : f32 to vector<64x128xf32>
      %c0_11 = arith.constant 0 : index
      %c0_12 = arith.constant 0 : index
      %13 = vector.load %arg8[%c0_11, %c0_12] : memref<64x128xf32, #tpu.memory_space<vmem>>, vector<64x128xf32>
      tpu.vector_store %arg8[%c0_11, %c0_12], %12 {strides = array<i32>} : memref<64x128xf32, #tpu.memory_space<vmem>>, vector<64x128xf32>,
    } else {
    }
    %c0 = arith.constant 0 : index
    %c0_1 = arith.constant 0 : index
    %3 = vector.load %arg8[%c0, %c0_1] : memref<64x128xf32, #tpu.memory_space<vmem>>, vector<64x128xf32>
    %c0_2 = arith.constant 0 : index
    %c0_3 = arith.constant 0 : index
    %4 = vector.load %arg3[%c0_2, %c0_3] : memref<64x128xbf16, #tpu.memory_space<vmem>>, vector<64x128xbf16>
    %c0_4 = arith.constant 0 : index
    %c0_5 = arith.constant 0 : index
    %5 = vector.load %arg4[%c0_4, %c0_5] : memref<128x128xbf16, #tpu.memory_space<vmem>>, vector<128x128xbf16>
    %cst = arith.constant dense<0.000000e+00> : vector<64x128xf32>
    %6 = tpu.matmul %4, %5, %cst {dimension_numbers = #tpu.dot_dimension_numbers<[1], [0], [0], [1], [0, 0, 1, 1], [], []>} : vector<64x128xbf16>, vector<128x128xbf16>, vector<64x128xf32> -> vector<64x128xf32>
    %7 = arith.addf %3, %6 : vector<64x128xf32>
    %c0_6 = arith.constant 0 : index
    %c0_7 = arith.constant 0 : index
    %8 = vector.load %arg8[%c0_6, %c0_7] : memref<64x128xf32, #tpu.memory_space<vmem>>, vector<64x128xf32>
    tpu.vector_store %arg8[%c0_6, %c0_7], %7 {strides = array<i32>} : memref<64x128xf32, #tpu.memory_space<vmem>>, vector<64x128xf32>,
    %c0_i32_8 = arith.constant 0 : i32
    %9 = arith.cmpi eq, %arg2, %c0_i32_8 : i32
    %10 = arith.extui %9 : i1 to i32
    %c0_i32_9 = arith.constant 0 : i32
    %11 = arith.cmpi ne, %10, %c0_i32_9 : i32
    scf.if %11 {
      %c0_10 = arith.constant 0 : index
      %c0_11 = arith.constant 0 : index
      %12 = vector.load %arg8[%c0_10, %c0_11] : memref<64x128xf32, #tpu.memory_space<vmem>>, vector<64x128xf32>
      %c0_12 = arith.constant 0 : index
      %c0_13 = arith.constant 0 : index
      %13 = vector.load %arg5[%c0_12, %c0_13] : memref<1x128xf32, #tpu.memory_space<vmem>>, vector<1x128xf32>
      %14 = vector.broadcast %13 : vector<1x128xf32> to vector<64x128xf32>
      %15 = arith.addf %12, %14 : vector<64x128xf32>
      %c0_14 = arith.constant 0 : index
      %c0_15 = arith.constant 0 : index
      %16 = vector.load %arg6[%c0_14, %c0_15] : memref<64x128xbf16, #tpu.memory_space<vmem>>, vector<64x128xbf16>
      %17 = arith.extf %16 : vector<64x128xbf16> to vector<64x128xf32>
      %18 = arith.addf %15, %17 : vector<64x128xf32>
      %cst_16 = arith.constant 0.000000e+00 : f32
      %19 = vector.broadcast %cst_16 : f32 to vector<64x128xf32>
      %20 = arith.maximumf %18, %19 : vector<64x128xf32>
      %c0_17 = arith.constant 0 : index
      %c0_18 = arith.constant 0 : index
      %21 = vector.load %arg7[%c0_17, %c0_18] : memref<64x128xf32, #tpu.memory_space<vmem>>, vector<64x128xf32>
      tpu.vector_store %arg7[%c0_17, %c0_18], %20 {strides = array<i32>} : memref<64x128xf32, #tpu.memory_space<vmem>>, vector<64x128xf32>,
    } else {
    }
    return
  }
  func.func @transform_0(%arg0: i32, %arg1: i32, %arg2: i32) -> (i32, i32) {
    %c0_i32 = arith.constant 0 : i32
    return %arg0, %arg2 : i32, i32
  }
  func.func @transform_1(%arg0: i32, %arg1: i32, %arg2: i32) -> (i32, i32) {
    %c0_i32 = arith.constant 0 : i32
    return %arg2, %arg1 : i32, i32
  }
  func.func @transform_2(%arg0: i32, %arg1: i32, %arg2: i32) -> (i32, i32) {
    %c0_i32 = arith.constant 0 : i32
    %c0_i32_0 = arith.constant 0 : i32
    return %c0_i32, %arg1 : i32, i32
  }
  func.func @transform_3(%arg0: i32, %arg1: i32, %arg2: i32) -> (i32, i32) {
    %c0_i32 = arith.constant 0 : i32
    return %arg0, %arg1 : i32, i32
  }
  func.func @transform_4(%arg0: i32, %arg1: i32, %arg2: i32) -> (i32, i32) {
    %c0_i32 = arith.constant 0 : i32
    return %arg0, %arg1 : i32, i32
  }
}

</mosaic_0001>

<bundles_post_ra>
// kernel: fwd.6
= control target key start
LH: loop header
LB: loop body
LE: loop exit
PB: predicated region body
PF: predicated region fallthrough
CT: control target
= control target key end

     0   :  { %s1499_s12 = smov 0   ;;  %s1501_s13 = smov 0   ;;  %s1636_s0 = inlined_call_operand.vmem [shape: bf16[512,128], index: 0, kind: input, shape index: {}]   ;;  %s1637_s1 = inlined_call_operand.vmem [shape: bf16[128,128], index: 1, kind: input, shape index: {}]   ;;  %s1638_s2 = inlined_call_operand.vmem [shape: f32[1,128], index: 2, kind: input, shape index: {}]   ;;  %s1639_s3 = inlined_call_operand.vmem [shape: bf16[512,128], index: 3, kind: output, shape index: {}]  }
   0x1   :  { %s1503_s14 = smov 0  }
   0x2 LB: > { %s32_s15 = sadd.s32 1, %s1473_s13  ;;  %p1128_p0 = scmp.ge.s32.totalorder %s1477_s14, 1  ;;  %s1477_s14 = sphi %s1503_s14, %s13_s14   ;;  %s1473_s13 = sphi %s1501_s13, %s1641_s13   ;;  %s1469_s12 = sphi %s1499_s12, %s1640_s12  }
   0x3   : > { %p34_p1 = scmp.ge.s32.totalorder %s32_s15, 2  ;;  %p188_p2 = scmp.lt.s32.totalorder %s1477_s14, 3 }
   0x5   : > { %s1643_s15 = smov (%p34_p1, %s32_s15), 0  ;;  %p189_p3 = pnand %p1128_p0, %p188_p2 }
   0x6   : > { %v1431_v0 = vld [vmem:[%s1637_s1] sm:$0xff] (!%p189_p3)   ;;  %s1129_s18 = sshll.u32 (!%p189_p3), %s1469_s12, 5  ;;  %v1432_v1 = vld [vmem:[%s1637_s1 + $0x8] sm:$0xff] (!%p189_p3)   ;;  %v1433_v2 = vld [vmem:[%s1637_s1 + $0x10] sm:$0xff] (!%p189_p3)  }
   0x7   : > { %192 = sbr.rel (%p189_p3) target bundleno = 285 (0x11d), region = 32  ;;  %p230_p4 = scmp.lt.s32.totalorder (!%p189_p3), %s1129_s18, 63  ;;  %1343 = vmatprep.subr.bf16.mxu0 (!%p189_p3), %v1431_v0  ;;  %1391 = vmatprep.subr.bf16.mxu1 (!%p189_p3), %v1431_v0  ;;  %v1434_v3 = vld [vmem:[%s1637_s1 + $0x18] sm:$0xff] (!%p189_p3)   ;;  %v1435_v6 = vld [vmem:[%s1637_s1 + $0x20] sm:$0xff] (!%p189_p3)   ;;  %v1436_v7 = vld [vmem:[%s1637_s1 + $0x28] sm:$0xff] (!%p189_p3)  }
   0x8   : > { %1344 = vmatpush3.bf16.msra.mxu0 (!%p189_p3), %v1431_v0  ;;  %1399 = vmatpush3.bf16.msra.mxu1 (!%p189_p3), %v1431_v0  ;;  %v1437_v8 = vld [vmem:[%s1637_s1 + $0x30] sm:$0xff] (!%p189_p3)   ;;  %v1438_v9 = vld [vmem:[%s1637_s1 + $0x38] sm:$0xff] (!%p189_p3)   ;;  %v1570_v24 = vld [vmem:[%s1638_s2] ss:$0 sm:$0xff] (!%p189_p3) }
   0x9   : > { %1345 = vmatprep.subr.bf16.mxu0 (!%p189_p3), %v1432_v1  ;;  %1392 = vmatprep.subr.bf16.mxu1 (!%p189_p3), %v1432_v1 }
   0xc   : > { %1346 = vmatpush3.bf16.msra.mxu0 (!%p189_p3), %v1432_v1  ;;  %1400 = vmatpush3.bf16.msra.mxu1 (!%p189_p3), %v1432_v1 }
   0xd   : > { %1347 = vmatprep.subr.bf16.mxu0 (!%p189_p3), %v1433_v2  ;;  %1393 = vmatprep.subr.bf16.mxu1 (!%p189_p3), %v1433_v2 }
   0xe   : > { %s1645_s18 = smov (!%p230_p4, %s1129_s18), 63 }
   0xf   : > { %s1130_s23 = sshll.u32 %s1645_s18, 2 }
  0x10   : > { %s1534_s26 = scalar_lea.vmem %s1636_s0, %s1130_s23  ;;  %1348 = vmatpush3.bf16.msra.mxu0 %v1433_v2  ;;  %1401 = vmatpush3.bf16.msra.mxu1 %v1433_v2  ;;  %s1585_s17 = scalar_lea.vmem %s1639_s3, %s1130_s23 }
  0x11   : > { %v1439_v4 = vld [vmem:[%s1534_s26] sm:$0xff]   ;;  %1349 = vmatprep.subr.bf16.mxu0 %v1434_v3  ;;  %1394 = vmatprep.subr.bf16.mxu1 %v1434_v3  ;;  %v1441_v10 = vld [vmem:[%s1534_s26 + $0x8] sm:$0xff]   ;;  %v1443_v12 = vld [vmem:[%s1534_s26 + $0x10] sm:$0xff]  }
  0x12   : > { %v1440_v5 = vld [vmem:[%s1534_s26 + $0x40] sm:$0xff]   ;;  %1359 = vmatprep.mubr.bf16.mxu0 %v1439_v4  ;;  %v1442_v11 = vld [vmem:[%s1534_s26 + $0x48] sm:$0xff]   ;;  %v1444_v13 = vld [vmem:[%s1534_s26 + $0x50] sm:$0xff]  }
  0x13   : > { %1375 = vmatprep.mubr.bf16.mxu1 %v1440_v5  ;;  %v1445_v14 = vld [vmem:[%s1534_s26 + $0x18] sm:$0xff]   ;;  %v1447_v16 = vld [vmem:[%s1534_s26 + $0x20] sm:$0xff]   ;;  %v1449_v18 = vld [vmem:[%s1534_s26 + $0x28] sm:$0xff]  }
  0x14   : > { %1350 = vmatpush3.bf16.msra.mxu0 %v1434_v3  ;;  %1402 = vmatpush3.bf16.msra.mxu1 %v1434_v3  ;;  %v1446_v15 = vld [vmem:[%s1534_s26 + $0x58] sm:$0xff]   ;;  %v1448_v17 = vld [vmem:[%s1534_s26 + $0x60] sm:$0xff]   ;;  %v1450_v19 = vld [vmem:[%s1534_s26 + $0x68] sm:$0xff]  }
  0x15   : > { %1351 = vmatprep.subr.bf16.mxu0 %v1435_v6  ;;  %1395 = vmatprep.subr.bf16.mxu1 %v1435_v6  ;;  %v1451_v20 = vld [vmem:[%s1534_s26 + $0x30] sm:$0xff]   ;;  %v1453_v22 = vld [vmem:[%s1534_s26 + $0x38] sm:$0xff]  }
  0x16   : > { %v1452_v21 = vld [vmem:[%s1534_s26 + $0x70] sm:$0xff]   ;;  %v1454_v23 = vld [vmem:[%s1534_s26 + $0x78] sm:$0xff]  }
  0x18   : > { %1352 = vmatpush3.bf16.msra.mxu0 %v1435_v6  ;;  %1403 = vmatpush3.bf16.msra.mxu1 %v1435_v6 }
  0x19   : > { %1353 = vmatprep.subr.bf16.mxu0 %v1436_v7  ;;  %1396 = vmatprep.subr.bf16.mxu1 %v1436_v7 }
  0x1c   : > { %1354 = vmatpush3.bf16.msra.mxu0 %v1436_v7  ;;  %1404 = vmatpush3.bf16.msra.mxu1 %v1436_v7 }
  0x1d   : > { %1355 = vmatprep.subr.bf16.mxu0 %v1437_v8  ;;  %1397 = vmatprep.subr.bf16.mxu1 %v1437_v8 }
  0x20   : > { %1356 = vmatpush3.bf16.msra.mxu0 %v1437_v8  ;;  %1405 = vmatpush3.bf16.msra.mxu1 %v1437_v8 }
  0x21   : > { %1357 = vmatprep.subr.bf16.mxu0 %v1438_v9  ;;  %1398 = vmatprep.subr.bf16.mxu1 %v1438_v9 }
  0x24   : > { %1358 = vmatpush3.bf16.msra.mxu0 %v1438_v9  ;;  %1406 = vmatpush3.bf16.msra.mxu1 %v1438_v9 }
  0x27   : > { %1360 = vmatmul.mubr.bf16.vlgmr.msra.gmra.mrb[0].mxu0 %v1441_v10  ;;  %1376 = vmatmul.mubr.bf16.vlgmr.msra.gmra.mrb[0].mxu1 %v1442_v11 }
  0x28   : > { %1363 = vmatprep.mubr.bf16.mxu0 %v1443_v12  ;;  %1379 = vmatprep.mubr.bf16.mxu1 %v1444_v13 }
  0x2f   : > { %1364 = vmatmul.mubr.bf16.gmra.mrb[4].mxu0 %v1445_v14  ;;  %1380 = vmatmul.mubr.bf16.gmra.mrb[4].mxu1 %v1446_v15 }
  0x30   : > { %1367 = vmatprep.mubr.bf16.mxu0 %v1447_v16  ;;  %1383 = vmatprep.mubr.bf16.mxu1 %v1448_v17 }
  0x37   : > { %1368 = vmatmul.mubr.bf16.gmra.mrb[8].mxu0 %v1449_v18  ;;  %1384 = vmatmul.mubr.bf16.gmra.mrb[8].mxu1 %v1450_v19 }
  0x38   : > { %1371 = vmatprep.mubr.bf16.mxu0 %v1451_v20  ;;  %1387 = vmatprep.mubr.bf16.mxu1 %v1452_v21 }
  0x3f   : > { %1372 = vmatmul.mubr.bf16.gmra.mrb[12].mxu0 %v1453_v22  ;;  %1388 = vmatmul.mubr.bf16.gmra.mrb[12].mxu1 %v1454_v23 }
  0xfa   : > { %v1361_v25 = vpop.f32.mrb[0].mxu0  ;;  %v1377_v26 = vpop.f32.mrb[0].mxu1 }
  0xfb   : > { %v789_v27 = vadd.f32 %v1361_v25, %v1570_v24  ;;  %v805_v28 = vadd.f32 %v1377_v26, %v1570_v24  ;;  %v554_v29 = vpop.f32.mrb[1].mxu0  ;;  %v618_v30 = vpop.f32.mrb[1].mxu1 }
  0xfc   : > { %v787_v31 = vadd.f32 %v1570_v24, %v554_v29  ;;  %v803_v32 = vadd.f32 %v1570_v24, %v618_v30  ;;  %v1362_v33 = vpop.f32.mrb[2].mxu0  ;;  %v1378_v34 = vpop.f32.mrb[2].mxu1 }
  0xfd   : > { %v790_v35 = vadd.f32 %v1362_v33, %v1570_v24  ;;  %v806_v36 = vadd.f32 %v1378_v34, %v1570_v24  ;;  %v557_v37 = vpop.f32.mrb[3].mxu0  ;;  %v621_v38 = vpop.f32.mrb[3].mxu1  ;;  %v821_v41 = vmax.f32 %v789_v27, 0.0  ;;  %v837_v42 = vmax.f32 %v805_v28, 0.0 }
  0xfe   : > { %v788_v39 = vadd.f32 %v1570_v24, %v557_v37  ;;  %v804_v40 = vadd.f32 %v1570_v24, %v621_v38  ;;  %v819_v45 = vmax.f32 %v787_v31, 0.0  ;;  %v835_v46 = vmax.f32 %v803_v32, 0.0 }
  0xff   : > { %v822_v43 = vmax.f32 %v790_v35, 0.0  ;;  %v838_v44 = vmax.f32 %v806_v36, 0.0 }
 0x100   : > { %v820_v47 = vmax.f32 %v788_v39, 0.0  ;;  %v836_v48 = vmax.f32 %v804_v40, 0.0 }
 0x101   : > { %v1232_v49 = vpack.c.bf16 %v822_v43, %v821_v41  ;;  %v1272_v50 = vpack.c.bf16 %v838_v44, %v837_v42 }
 0x102   : > { %v1227_v51 = vpack.c.bf16 %v820_v47, %v819_v45  ;;  %v1267_v52 = vpack.c.bf16 %v836_v48, %v835_v46  ;;  %v1365_v53 = vpop.f32.mrb[4].mxu0  ;;  %v1381_v54 = vpop.f32.mrb[4].mxu1 }
 0x103   : > { %1304 = vst [vmem:[%s1585_s17 + $0x8] sm:$0xff] %v1232_v49   ;;  %1312 = vst [vmem:[%s1585_s17 + $0x48] sm:$0xff] %v1272_v50   ;;  %v793_v55 = vadd.f32 %v1365_v53, %v1570_v24  ;;  %v809_v56 = vadd.f32 %v1381_v54, %v1570_v24  ;;  %v570_v57 = vpop.f32.mrb[5].mxu0  ;;  %v634_v58 = vpop.f32.mrb[5].mxu1 }
 0x104   : > { %1228 = vst [vmem:[%s1585_s17] sm:$0xff] %v1227_v51   ;;  %1311 = vst [vmem:[%s1585_s17 + $0x40] sm:$0xff] %v1267_v52   ;;  %v791_v59 = vadd.f32 %v1570_v24, %v570_v57  ;;  %v807_v60 = vadd.f32 %v1570_v24, %v634_v58  ;;  %v1366_v61 = vpop.f32.mrb[6].mxu0  ;;  %v1382_v62 = vpop.f32.mrb[6].mxu1 }
 0x105   : > { %v794_v63 = vadd.f32 %v1366_v61, %v1570_v24  ;;  %v810_v0 = vadd.f32 %v1382_v62, %v1570_v24  ;;  %v573_v1 = vpop.f32.mrb[7].mxu0  ;;  %v637_v2 = vpop.f32.mrb[7].mxu1  ;;  %v825_v5 = vmax.f32 %v793_v55, 0.0  ;;  %v841_v6 = vmax.f32 %v809_v56, 0.0 }
 0x106   : > { %v792_v3 = vadd.f32 %v1570_v24, %v573_v1  ;;  %v808_v4 = vadd.f32 %v1570_v24, %v637_v2  ;;  %v823_v9 = vmax.f32 %v791_v59, 0.0  ;;  %v839_v10 = vmax.f32 %v807_v60, 0.0 }
 0x107   : > { %v826_v7 = vmax.f32 %v794_v63, 0.0  ;;  %v842_v8 = vmax.f32 %v810_v0, 0.0 }
 0x108   : > { %v824_v11 = vmax.f32 %v792_v3, 0.0  ;;  %v840_v12 = vmax.f32 %v808_v4, 0.0 }
 0x109   : > { %v1242_v13 = vpack.c.bf16 %v826_v7, %v825_v5  ;;  %v1282_v14 = vpack.c.bf16 %v842_v8, %v841_v6 }
 0x10a   : > { %v1237_v15 = vpack.c.bf16 %v824_v11, %v823_v9  ;;  %v1277_v16 = vpack.c.bf16 %v840_v12, %v839_v10  ;;  %v1369_v17 = vpop.f32.mrb[8].mxu0  ;;  %v1385_v18 = vpop.f32.mrb[8].mxu1 }
 0x10b   : > { %1306 = vst [vmem:[%s1585_s17 + $0x18] sm:$0xff] %v1242_v13   ;;  %1314 = vst [vmem:[%s1585_s17 + $0x58] sm:$0xff] %v1282_v14   ;;  %v797_v19 = vadd.f32 %v1369_v17, %v1570_v24  ;;  %v813_v20 = vadd.f32 %v1385_v18, %v1570_v24  ;;  %v586_v21 = vpop.f32.mrb[9].mxu0  ;;  %v650_v22 = vpop.f32.mrb[9].mxu1 }
 0x10c   : > { %1305 = vst [vmem:[%s1585_s17 + $0x10] sm:$0xff] %v1237_v15   ;;  %1313 = vst [vmem:[%s1585_s17 + $0x50] sm:$0xff] %v1277_v16   ;;  %v795_v23 = vadd.f32 %v1570_v24, %v586_v21  ;;  %v811_v25 = vadd.f32 %v1570_v24, %v650_v22  ;;  %v1370_v26 = vpop.f32.mrb[10].mxu0  ;;  %v1386_v27 = vpop.f32.mrb[10].mxu1 }
 0x10d   : > { %v798_v28 = vadd.f32 %v1370_v26, %v1570_v24  ;;  %v814_v29 = vadd.f32 %v1386_v27, %v1570_v24  ;;  %v589_v30 = vpop.f32.mrb[11].mxu0  ;;  %v653_v31 = vpop.f32.mrb[11].mxu1  ;;  %v829_v34 = vmax.f32 %v797_v19, 0.0  ;;  %v845_v35 = vmax.f32 %v813_v20, 0.0 }
 0x10e   : > { %v796_v32 = vadd.f32 %v1570_v24, %v589_v30  ;;  %v812_v33 = vadd.f32 %v1570_v24, %v653_v31  ;;  %v827_v38 = vmax.f32 %v795_v23, 0.0  ;;  %v843_v39 = vmax.f32 %v811_v25, 0.0 }
 0x10f   : > { %v830_v36 = vmax.f32 %v798_v28, 0.0  ;;  %v846_v37 = vmax.f32 %v814_v29, 0.0 }
 0x110   : > { %v828_v40 = vmax.f32 %v796_v32, 0.0  ;;  %v844_v41 = vmax.f32 %v812_v33, 0.0 }
 0x111   : > { %v1252_v42 = vpack.c.bf16 %v830_v36, %v829_v34  ;;  %v1292_v43 = vpack.c.bf16 %v846_v37, %v845_v35 }
 0x112   : > { %v1247_v44 = vpack.c.bf16 %v828_v40, %v827_v38  ;;  %v1287_v45 = vpack.c.bf16 %v844_v41, %v843_v39  ;;  %v1373_v46 = vpop.f32.mrb[12].mxu0  ;;  %v1389_v47 = vpop.f32.mrb[12].mxu1 }
 0x113   : > { %1308 = vst [vmem:[%s1585_s17 + $0x28] sm:$0xff] %v1252_v42   ;;  %1316 = vst [vmem:[%s1585_s17 + $0x68] sm:$0xff] %v1292_v43   ;;  %v801_v48 = vadd.f32 %v1373_v46, %v1570_v24  ;;  %v817_v49 = vadd.f32 %v1389_v47, %v1570_v24  ;;  %v602_v50 = vpop.f32.mrb[13].mxu0  ;;  %v666_v51 = vpop.f32.mrb[13].mxu1 }
 0x114   : > { %1307 = vst [vmem:[%s1585_s17 + $0x20] sm:$0xff] %v1247_v44   ;;  %1315 = vst [vmem:[%s1585_s17 + $0x60] sm:$0xff] %v1287_v45   ;;  %v799_v52 = vadd.f32 %v1570_v24, %v602_v50  ;;  %v815_v53 = vadd.f32 %v1570_v24, %v666_v51  ;;  %v1374_v54 = vpop.f32.mrb[14].mxu0  ;;  %v1390_v55 = vpop.f32.mrb[14].mxu1 }
 0x115   : > { %v802_v56 = vadd.f32 %v1374_v54, %v1570_v24  ;;  %v818_v57 = vadd.f32 %v1390_v55, %v1570_v24  ;;  %v605_v58 = vpop.f32.mrb[15].mxu0  ;;  %v669_v59 = vpop.f32.mrb[15].mxu1  ;;  %v833_v62 = vmax.f32 %v801_v48, 0.0  ;;  %v849_v63 = vmax.f32 %v817_v49, 0.0 }
 0x116   : > { %v800_v60 = vadd.f32 %v1570_v24, %v605_v58  ;;  %v816_v61 = vadd.f32 %v1570_v24, %v669_v59  ;;  %v831_v2 = vmax.f32 %v799_v52, 0.0  ;;  %v847_v3 = vmax.f32 %v815_v53, 0.0 }
 0x117   : > { %v834_v0 = vmax.f32 %v802_v56, 0.0  ;;  %v850_v1 = vmax.f32 %v818_v57, 0.0 }
 0x118   : > { %v832_v4 = vmax.f32 %v800_v60, 0.0  ;;  %v848_v5 = vmax.f32 %v816_v61, 0.0 }
 0x119   : > { %v1262_v6 = vpack.c.bf16 %v834_v0, %v833_v62  ;;  %v1302_v7 = vpack.c.bf16 %v850_v1, %v849_v63 }
 0x11a   : > { %v1257_v8 = vpack.c.bf16 %v832_v4, %v831_v2  ;;  %v1297_v9 = vpack.c.bf16 %v848_v5, %v847_v3 }
 0x11b   : > { %1310 = vst [vmem:[%s1585_s17 + $0x38] sm:$0xff] %v1262_v6   ;;  %1318 = vst [vmem:[%s1585_s17 + $0x78] sm:$0xff] %v1302_v7  }
 0x11c   : > { %1309 = vst [vmem:[%s1585_s17 + $0x30] sm:$0xff] %v1257_v8   ;;  %1317 = vst [vmem:[%s1585_s17 + $0x70] sm:$0xff] %v1297_v9  }
 0x11d PF: > { %s13_s14 = sadd.s32 1, %s1477_s14   ;;  %s1640_s12 = smov %s1473_s13 }
 0x11e   : > { %p10_p5 = scmp.ge.s32.totalorder %s13_s14, 4   ;;  %s1641_s13 = smov %s1643_s15 }
 0x120   :  { %12 = sbr.rel (!%p10_p5) target bundleno = 2 (0x2), region = 76 }

// kernel: fwd.8
= control target key start
LH: loop header
LB: loop body
LE: loop exit
PB: predicated region body
PF: predicated region fallthrough
CT: control target
= control target key end

     0   :  { %s1114_s18 = smov 0   ;;  %s1116_s19 = smov 0   ;;  %s1227_s0 = inlined_call_operand.vmem [shape: bf16[128,128], index: 0, kind: input, shape index: {}]   ;;  %s1228_s1 = inlined_call_operand.vmem [shape: bf16[128,128], index: 1, kind: input, shape index: {}]   ;;  %s1229_s2 = inlined_call_operand.vmem [shape: f32[1,128], index: 2, kind: input, shape index: {}]   ;;  %s1230_s3 = inlined_call_operand.vmem [shape: bf16[128,128], index: 3, kind: input, shape index: {}]   ;;  %s1231_s4 = inlined_call_operand.vmem [shape: bf16[128,128], index: 4, kind: input, shape index: {}]   ;;  %s1232_s5 = inlined_call_operand.vmem [shape: f32[128,128], index: 5, kind: output, shape index: {}]  }
   0x1   :  { %s1118_s20 = smov 0  }
   0x2 LB: > { %s34_s21 = sadd.s32 1, %s1078_s19  ;;  %p898_p0 = scmp.ge.s32.totalorder %s1082_s20, 1  ;;  %s1082_s20 = sphi %s1118_s20, %s15_s20   ;;  %s1078_s19 = sphi %s1116_s19, %s1234_s19   ;;  %s1074_s18 = sphi %s1114_s18, %s1233_s18  }
   0x3   : > { %p36_p1 = scmp.ge.s32.totalorder %s34_s21, 2  ;;  %p258_p2 = scmp.lt.s32.totalorder %s1082_s20, 3 }
   0x5   : > { %s1236_s21 = smov (%p36_p1, %s34_s21), 0  ;;  %p259_p3 = pnand %p898_p0, %p258_p2 }
   0x6   : > { %v1036_v0 = vld [vmem:[%s1231_s4] sm:$0xff] (!%p259_p3)   ;;  %s899_s24 = sshll.u32 (!%p259_p3), %s1074_s18, 3  ;;  %v1038_v2 = vld [vmem:[%s1231_s4 + $0x8] sm:$0xff] (!%p259_p3)   ;;  %v1040_v4 = vld [vmem:[%s1231_s4 + $0x10] sm:$0xff] (!%p259_p3)  }
   0x7   : > { %262 = sbr.rel (%p259_p3) target bundleno = 270 (0x10e), region = 40  ;;  %v1037_v1 = vld [vmem:[%s1228_s1] sm:$0xff] (!%p259_p3)   ;;  %956 = vmatprep.subr.bf16.mxu1 (!%p259_p3), %v1036_v0  ;;  %p313_p4 = scmp.lt.s32.totalorder (!%p259_p3), %s899_s24, 15  ;;  %v1039_v3 = vld [vmem:[%s1228_s1 + $0x8] sm:$0xff] (!%p259_p3)   ;;  %v1041_v5 = vld [vmem:[%s1228_s1 + $0x10] sm:$0xff] (!%p259_p3)  }
   0x8   : > { %980 = vmatprep.subr.bf16.mxu0 (!%p259_p3), %v1037_v1  ;;  %957 = vmatpush3.bf16.msra.mxu1 (!%p259_p3), %v1036_v0  ;;  %v1042_v6 = vld [vmem:[%s1231_s4 + $0x18] sm:$0xff] (!%p259_p3)   ;;  %v1044_v8 = vld [vmem:[%s1231_s4 + $0x20] sm:$0xff] (!%p259_p3)   ;;  %v1046_v10 = vld [vmem:[%s1231_s4 + $0x28] sm:$0xff] (!%p259_p3)  }
   0x9   : > { %981 = vmatpush3.bf16.msra.mxu0 (!%p259_p3), %v1037_v1  ;;  %958 = vmatprep.subr.bf16.mxu1 (!%p259_p3), %v1038_v2  ;;  %v1043_v7 = vld [vmem:[%s1228_s1 + $0x18] sm:$0xff] (!%p259_p3)   ;;  %v1045_v9 = vld [vmem:[%s1228_s1 + $0x20] sm:$0xff] (!%p259_p3)   ;;  %v1047_v11 = vld [vmem:[%s1228_s1 + $0x28] sm:$0xff] (!%p259_p3)  }
   0xa   : > { %982 = vmatprep.subr.bf16.mxu0 (!%p259_p3), %v1039_v3  ;;  %v1048_v14 = vld [vmem:[%s1231_s4 + $0x30] sm:$0xff] (!%p259_p3)   ;;  %v1050_v16 = vld [vmem:[%s1231_s4 + $0x38] sm:$0xff] (!%p259_p3)   ;;  %v929_v26 = vld [vmem:[%s1229_s2] ss:$0 sm:$0xff] (!%p259_p3) }
   0xb   : > { %v1049_v15 = vld [vmem:[%s1228_s1 + $0x30] sm:$0xff] (!%p259_p3)   ;;  %v1051_v17 = vld [vmem:[%s1228_s1 + $0x38] sm:$0xff] (!%p259_p3)  }
   0xc   : > { %959 = vmatpush3.bf16.msra.mxu1 (!%p259_p3), %v1038_v2 }
   0xd   : > { %983 = vmatpush3.bf16.msra.mxu0 (!%p259_p3), %v1039_v3  ;;  %960 = vmatprep.subr.bf16.mxu1 (!%p259_p3), %v1040_v4 }
   0xe   : > { %s1238_s24 = smov (!%p313_p4, %s899_s24), 15  ;;  %984 = vmatprep.subr.bf16.mxu0 %v1041_v5 }
   0xf   : > { %s900_s14 = sshll.u32 %s1238_s24, 2  ;;  %s904_s18 = sshll.u32 %s1238_s24, 3 }
  0x10   : > { %961 = vmatpush3.bf16.msra.mxu1 %v1040_v4  ;;  %s1168_s25 = scalar_lea.vmem %s1230_s3, %s900_s14  ;;  %s1176_s30 = scalar_lea.vmem %s1227_s0, %s900_s14 }
  0x11   : > { %985 = vmatpush3.bf16.msra.mxu0 %v1041_v5  ;;  %962 = vmatprep.subr.bf16.mxu1 %v1042_v6  ;;  %v1052_v12 = vld [vmem:[%s1168_s25] sm:$0xff]   ;;  %v1054_v18 = vld [vmem:[%s1168_s25 + $0x8] sm:$0xff]   ;;  %v1056_v20 = vld [vmem:[%s1168_s25 + $0x10] sm:$0xff]  }
  0x12   : > { %986 = vmatprep.subr.bf16.mxu0 %v1043_v7  ;;  %v1053_v13 = vld [vmem:[%s1176_s30] sm:$0xff]   ;;  %972 = vmatprep.mubr.bf16.mxu1 %v1052_v12  ;;  %v1055_v19 = vld [vmem:[%s1176_s30 + $0x8] sm:$0xff]   ;;  %v1057_v21 = vld [vmem:[%s1176_s30 + $0x10] sm:$0xff]  }
  0x13   : > { %996 = vmatprep.mubr.bf16.mxu0 %v1053_v13  ;;  %v1058_v22 = vld [vmem:[%s1168_s25 + $0x18] sm:$0xff]   ;;  %s1208_s25 = scalar_lea.vmem %s1232_s5, %s904_s18 }
  0x14   : > { %963 = vmatpush3.bf16.msra.mxu1 %v1042_v6  ;;  %v1059_v23 = vld [vmem:[%s1176_s30 + $0x18] sm:$0xff]  }
  0x15   : > { %987 = vmatpush3.bf16.msra.mxu0 %v1043_v7  ;;  %964 = vmatprep.subr.bf16.mxu1 %v1044_v8 }
  0x16   : > { %988 = vmatprep.subr.bf16.mxu0 %v1045_v9 }
  0x18   : > { %965 = vmatpush3.bf16.msra.mxu1 %v1044_v8 }
  0x19   : > { %989 = vmatpush3.bf16.msra.mxu0 %v1045_v9  ;;  %966 = vmatprep.subr.bf16.mxu1 %v1046_v10 }
  0x1a   : > { %990 = vmatprep.subr.bf16.mxu0 %v1047_v11 }
  0x1c   : > { %967 = vmatpush3.bf16.msra.mxu1 %v1046_v10 }
  0x1d   : > { %991 = vmatpush3.bf16.msra.mxu0 %v1047_v11  ;;  %968 = vmatprep.subr.bf16.mxu1 %v1048_v14 }
  0x1e   : > { %992 = vmatprep.subr.bf16.mxu0 %v1049_v15 }
  0x20   : > { %969 = vmatpush3.bf16.msra.mxu1 %v1048_v14 }
  0x21   : > { %993 = vmatpush3.bf16.msra.mxu0 %v1049_v15  ;;  %970 = vmatprep.subr.bf16.mxu1 %v1050_v16 }
  0x22   : > { %994 = vmatprep.subr.bf16.mxu0 %v1051_v17 }
  0x24   : > { %971 = vmatpush3.bf16.msra.mxu1 %v1050_v16 }
  0x25   : > { %995 = vmatpush3.bf16.msra.mxu0 %v1051_v17 }
  0x27   : > { %973 = vmatmul.mubr.bf16.vlgmr.msra.gmra.mrb[0].mxu1 %v1054_v18 }
  0x28   : > { %997 = vmatmul.mubr.bf16.vlgmr.msra.gmra.mrb[0].mxu0 %v1055_v19  ;;  %976 = vmatprep.mubr.bf16.mxu1 %v1056_v20 }
  0x29   : > { %1000 = vmatprep.mubr.bf16.mxu0 %v1057_v21 }
  0x2f   : > { %977 = vmatmul.mubr.bf16.gmra.mrb[4].mxu1 %v1058_v22 }
  0x30   : > { %1001 = vmatmul.mubr.bf16.gmra.mrb[4].mxu0 %v1059_v23 }
  0xfa   : > { %v974_v24 = vpop.f32.mrb[0].mxu1 }
  0xfb   : > { %v998_v25 = vpop.f32.mrb[0].mxu0  ;;  %v487_v27 = vpop.f32.mrb[1].mxu1 }
  0xfc   : > { %v697_v28 = vadd.f32 %v998_v25, %v974_v24  ;;  %v664_v29 = vpop.f32.mrb[1].mxu0  ;;  %v975_v30 = vpop.f32.mrb[2].mxu1 }
  0xfd   : > { %v695_v31 = vadd.f32 %v664_v29, %v487_v27  ;;  %v999_v32 = vpop.f32.mrb[2].mxu0  ;;  %v490_v33 = vpop.f32.mrb[3].mxu1 }
  0xfe   : > { %v731_v34 = vadd.f32 %v929_v26, %v697_v28  ;;  %v698_v35 = vadd.f32 %v999_v32, %v975_v30  ;;  %v667_v36 = vpop.f32.mrb[3].mxu0 }
  0xff   : > { %v729_v37 = vadd.f32 %v929_v26, %v695_v31  ;;  %v696_v38 = vadd.f32 %v667_v36, %v490_v33 }
 0x100   : > { %v739_v39 = vmax.f32 %v731_v34, 0.0  ;;  %v732_v40 = vadd.f32 %v929_v26, %v698_v35 }
 0x101   : > { %v737_v41 = vmax.f32 %v729_v37, 0.0  ;;  %v730_v42 = vadd.f32 %v929_v26, %v696_v38 }
 0x102   : > { %747 = vst [vmem:[%s1208_s25 + $0x10] sm:$0xff] %v739_v39  ;;  %v740_v43 = vmax.f32 %v732_v40, 0.0  ;;  %v978_v44 = vpop.f32.mrb[4].mxu1 }
 0x103   : > { %745 = vst [vmem:[%s1208_s25] sm:$0xff] %v737_v41  ;;  %v738_v45 = vmax.f32 %v730_v42, 0.0  ;;  %v1002_v46 = vpop.f32.mrb[4].mxu0  ;;  %v503_v47 = vpop.f32.mrb[5].mxu1 }
 0x104   : > { %748 = vst [vmem:[%s1208_s25 + $0x18] sm:$0xff] %v740_v43  ;;  %v701_v48 = vadd.f32 %v1002_v46, %v978_v44  ;;  %v680_v49 = vpop.f32.mrb[5].mxu0  ;;  %v979_v50 = vpop.f32.mrb[6].mxu1 }
 0x105   : > { %746 = vst [vmem:[%s1208_s25 + $0x8] sm:$0xff] %v738_v45  ;;  %v699_v51 = vadd.f32 %v680_v49, %v503_v47  ;;  %v1003_v52 = vpop.f32.mrb[6].mxu0  ;;  %v506_v53 = vpop.f32.mrb[7].mxu1 }
 0x106   : > { %v735_v54 = vadd.f32 %v929_v26, %v701_v48  ;;  %v702_v55 = vadd.f32 %v1003_v52, %v979_v50  ;;  %v683_v56 = vpop.f32.mrb[7].mxu0 }
 0x107   : > { %v733_v57 = vadd.f32 %v929_v26, %v699_v51  ;;  %v700_v58 = vadd.f32 %v683_v56, %v506_v53 }
 0x108   : > { %v743_v59 = vmax.f32 %v735_v54, 0.0  ;;  %v736_v60 = vadd.f32 %v929_v26, %v702_v55 }
 0x109   : > { %v741_v61 = vmax.f32 %v733_v57, 0.0  ;;  %v734_v62 = vadd.f32 %v929_v26, %v700_v58 }
 0x10a   : > { %751 = vst [vmem:[%s1208_s25 + $0x30] sm:$0xff] %v743_v59  ;;  %v744_v63 = vmax.f32 %v736_v60, 0.0 }
 0x10b   : > { %749 = vst [vmem:[%s1208_s25 + $0x20] sm:$0xff] %v741_v61  ;;  %v742_v0 = vmax.f32 %v734_v62, 0.0 }
 0x10c   : > { %752 = vst [vmem:[%s1208_s25 + $0x38] sm:$0xff] %v744_v63 }
 0x10d   : > { %750 = vst [vmem:[%s1208_s25 + $0x28] sm:$0xff] %v742_v0 }
 0x10e PF: > { %s15_s20 = sadd.s32 1, %s1082_s20   ;;  %s1233_s18 = smov %s1078_s19 }
 0x10f   : > { %p12_p5 = scmp.ge.s32.totalorder %s15_s20, 4   ;;  %s1234_s19 = smov %s1236_s21 }
 0x111   :  { %14 = sbr.rel (!%p12_p5) target bundleno = 2 (0x2), region = 90 }

// kernel: fwd.9
= control target key start
LH: loop header
LB: loop body
LE: loop exit
PB: predicated region body
PF: predicated region fallthrough
CT: control target
= control target key end

     0   :  { %s839_s12 = smov 0   ;;  %s841_s13 = smov 0   ;;  %s912_s0 = inlined_call_operand.vmem [shape: bf16[128,128], index: 0, kind: input, shape index: {}]   ;;  %s913_s1 = inlined_call_operand.vmem [shape: bf16[128,128], index: 1, kind: input, shape index: {}]   ;;  %s914_s2 = inlined_call_operand.vmem [shape: f32[1,128], index: 2, kind: input, shape index: {}]   ;;  %s915_s3 = inlined_call_operand.vmem [shape: bf16[128,128], index: 3, kind: output, shape index: {}]  }
   0x1   :  { %s843_s14 = smov 0  }
   0x2 LB: > { %s32_s15 = sadd.s32 1, %s813_s13  ;;  %p648_p0 = scmp.ge.s32.totalorder %s817_s14, 1  ;;  %s817_s14 = sphi %s843_s14, %s13_s14   ;;  %s813_s13 = sphi %s841_s13, %s917_s13   ;;  %s809_s12 = sphi %s839_s12, %s916_s12  }
   0x3   : > { %p34_p1 = scmp.ge.s32.totalorder %s32_s15, 2  ;;  %p188_p2 = scmp.lt.s32.totalorder %s817_s14, 3 }
   0x5   : > { %s919_s15 = smov (%p34_p1, %s32_s15), 0  ;;  %p189_p3 = pnand %p648_p0, %p188_p2 }
   0x6   : > { %v783_v0 = vld [vmem:[%s913_s1] sm:$0xff] (!%p189_p3)   ;;  %s649_s18 = sshll.u32 (!%p189_p3), %s809_s12, 3  ;;  %v784_v1 = vld [vmem:[%s913_s1 + $0x8] sm:$0xff] (!%p189_p3)   ;;  %v785_v2 = vld [vmem:[%s913_s1 + $0x10] sm:$0xff] (!%p189_p3)  }
   0x7   : > { %192 = sbr.rel (%p189_p3) target bundleno = 261 (0x105), region = 32  ;;  %p230_p4 = scmp.lt.s32.totalorder (!%p189_p3), %s649_s18, 15  ;;  %719 = vmatprep.subr.bf16.mxu0 (!%p189_p3), %v783_v0  ;;  %743 = vmatprep.subr.bf16.mxu1 (!%p189_p3), %v783_v0  ;;  %v786_v3 = vld [vmem:[%s913_s1 + $0x18] sm:$0xff] (!%p189_p3)   ;;  %v787_v6 = vld [vmem:[%s913_s1 + $0x20] sm:$0xff] (!%p189_p3)   ;;  %v788_v7 = vld [vmem:[%s913_s1 + $0x28] sm:$0xff] (!%p189_p3)  }
   0x8   : > { %720 = vmatpush3.bf16.msra.mxu0 (!%p189_p3), %v783_v0  ;;  %751 = vmatpush3.bf16.msra.mxu1 (!%p189_p3), %v783_v0  ;;  %v789_v8 = vld [vmem:[%s913_s1 + $0x30] sm:$0xff] (!%p189_p3)   ;;  %v790_v9 = vld [vmem:[%s913_s1 + $0x38] sm:$0xff] (!%p189_p3)   ;;  %v665_v12 = vld [vmem:[%s914_s2] ss:$0 sm:$0xff] (!%p189_p3) }
   0x9   : > { %721 = vmatprep.subr.bf16.mxu0 (!%p189_p3), %v784_v1  ;;  %744 = vmatprep.subr.bf16.mxu1 (!%p189_p3), %v784_v1 }
   0xc   : > { %722 = vmatpush3.bf16.msra.mxu0 (!%p189_p3), %v784_v1  ;;  %752 = vmatpush3.bf16.msra.mxu1 (!%p189_p3), %v784_v1 }
   0xd   : > { %723 = vmatprep.subr.bf16.mxu0 (!%p189_p3), %v785_v2  ;;  %745 = vmatprep.subr.bf16.mxu1 (!%p189_p3), %v785_v2 }
   0xe   : > { %s921_s18 = smov (!%p230_p4, %s649_s18), 15 }
   0xf   : > { %s650_s23 = sshll.u32 %s921_s18, 2 }
  0x10   : > { %s874_s26 = scalar_lea.vmem %s912_s0, %s650_s23  ;;  %724 = vmatpush3.bf16.msra.mxu0 %v785_v2  ;;  %753 = vmatpush3.bf16.msra.mxu1 %v785_v2  ;;  %s257_s17 = scalar_lea.vmem %s915_s3, %s650_s23 }
  0x11   : > { %v791_v4 = vld [vmem:[%s874_s26] sm:$0xff]   ;;  %v792_v5 = vld [vmem:[%s874_s26 + $0x10] sm:$0xff]   ;;  %725 = vmatprep.subr.bf16.mxu0 %v786_v3  ;;  %746 = vmatprep.subr.bf16.mxu1 %v786_v3  ;;  %v793_v10 = vld [vmem:[%s874_s26 + $0x8] sm:$0xff]  }
  0x12   : > { %735 = vmatprep.mubr.bf16.mxu0 %v791_v4  ;;  %739 = vmatprep.mubr.bf16.mxu1 %v792_v5  ;;  %v794_v11 = vld [vmem:[%s874_s26 + $0x18] sm:$0xff]  }
  0x14   : > { %726 = vmatpush3.bf16.msra.mxu0 %v786_v3  ;;  %754 = vmatpush3.bf16.msra.mxu1 %v786_v3 }
  0x15   : > { %727 = vmatprep.subr.bf16.mxu0 %v787_v6  ;;  %747 = vmatprep.subr.bf16.mxu1 %v787_v6 }
  0x18   : > { %728 = vmatpush3.bf16.msra.mxu0 %v787_v6  ;;  %755 = vmatpush3.bf16.msra.mxu1 %v787_v6 }
  0x19   : > { %729 = vmatprep.subr.bf16.mxu0 %v788_v7  ;;  %748 = vmatprep.subr.bf16.mxu1 %v788_v7 }
  0x1c   : > { %730 = vmatpush3.bf16.msra.mxu0 %v788_v7  ;;  %756 = vmatpush3.bf16.msra.mxu1 %v788_v7 }
  0x1d   : > { %731 = vmatprep.subr.bf16.mxu0 %v789_v8  ;;  %749 = vmatprep.subr.bf16.mxu1 %v789_v8 }
  0x20   : > { %732 = vmatpush3.bf16.msra.mxu0 %v789_v8  ;;  %757 = vmatpush3.bf16.msra.mxu1 %v789_v8 }
  0x21   : > { %733 = vmatprep.subr.bf16.mxu0 %v790_v9  ;;  %750 = vmatprep.subr.bf16.mxu1 %v790_v9 }
  0x24   : > { %734 = vmatpush3.bf16.msra.mxu0 %v790_v9  ;;  %758 = vmatpush3.bf16.msra.mxu1 %v790_v9 }
  0x27   : > { %736 = vmatmul.mubr.bf16.vlgmr.msra.gmra.mrb[0].mxu0 %v793_v10  ;;  %740 = vmatmul.mubr.bf16.vlgmr.msra.gmra.mrb[0].mxu1 %v794_v11 }
  0xfa   : > { %v737_v13 = vpop.f32.mrb[0].mxu0  ;;  %v741_v14 = vpop.f32.mrb[0].mxu1 }
  0xfb   : > { %v477_v15 = vadd.f32 %v737_v13, %v665_v12  ;;  %v481_v16 = vadd.f32 %v741_v14, %v665_v12  ;;  %v410_v17 = vpop.f32.mrb[1].mxu0  ;;  %v426_v18 = vpop.f32.mrb[1].mxu1 }
  0xfc   : > { %v475_v19 = vadd.f32 %v665_v12, %v410_v17  ;;  %v479_v20 = vadd.f32 %v665_v12, %v426_v18  ;;  %v738_v21 = vpop.f32.mrb[2].mxu0  ;;  %v742_v22 = vpop.f32.mrb[2].mxu1 }
  0xfd   : > { %v478_v23 = vadd.f32 %v738_v21, %v665_v12  ;;  %v482_v24 = vadd.f32 %v742_v22, %v665_v12  ;;  %v413_v25 = vpop.f32.mrb[3].mxu0  ;;  %v429_v26 = vpop.f32.mrb[3].mxu1  ;;  %v485_v29 = vmax.f32 %v477_v15, 0.0  ;;  %v489_v30 = vmax.f32 %v481_v16, 0.0 }
  0xfe   : > { %v476_v27 = vadd.f32 %v665_v12, %v413_v25  ;;  %v480_v28 = vadd.f32 %v665_v12, %v429_v26  ;;  %v483_v33 = vmax.f32 %v475_v19, 0.0  ;;  %v487_v34 = vmax.f32 %v479_v20, 0.0 }
  0xff   : > { %v486_v31 = vmax.f32 %v478_v23, 0.0  ;;  %v490_v32 = vmax.f32 %v482_v24, 0.0 }
 0x100   : > { %v484_v35 = vmax.f32 %v476_v27, 0.0  ;;  %v488_v36 = vmax.f32 %v480_v28, 0.0 }
 0x101   : > { %v692_v37 = vpack.c.bf16 %v486_v31, %v485_v29  ;;  %v702_v38 = vpack.c.bf16 %v490_v32, %v489_v30 }
 0x102   : > { %v687_v39 = vpack.c.bf16 %v484_v35, %v483_v33  ;;  %v697_v40 = vpack.c.bf16 %v488_v36, %v487_v34 }
 0x103   : > { %704 = vst [vmem:[%s257_s17 + $0x8] sm:$0xff] %v692_v37   ;;  %706 = vst [vmem:[%s257_s17 + $0x18] sm:$0xff] %v702_v38  }
 0x104   : > { %688 = vst [vmem:[%s257_s17] sm:$0xff] %v687_v39   ;;  %705 = vst [vmem:[%s257_s17 + $0x10] sm:$0xff] %v697_v40  }
 0x105 PF: > { %s13_s14 = sadd.s32 1, %s817_s14   ;;  %s916_s12 = smov %s813_s13 }
 0x106   : > { %p10_p5 = scmp.ge.s32.totalorder %s13_s14, 4   ;;  %s917_s13 = smov %s919_s15 }
 0x108   :  { %12 = sbr.rel (!%p10_p5) target bundleno = 2 (0x2), region = 76 }

// kernel: fwd.7
= control target key start
LH: loop header
LB: loop body
LE: loop exit
PB: predicated region body
PF: predicated region fallthrough
CT: control target
= control target key end

     0   :  { %s2183_s12 = smov 0   ;;  %s2185_s13 = smov 0   ;;  %s2483_s0 = inlined_call_operand.vmem [shape: bf16[128,1152], index: 0, kind: input, shape index: {}]   ;;  %s2484_s1 = inlined_call_operand.vmem [shape: bf16[1152,128], index: 1, kind: input, shape index: {}]   ;;  %s2485_s2 = inlined_call_operand.vmem [shape: f32[1,128], index: 2, kind: input, shape index: {}]   ;;  %s2486_s3 = inlined_call_operand.vmem [shape: bf16[128,128], index: 3, kind: output, shape index: {}]  }
   0x1   :  { %s2187_s14 = smov 0  }
   0x2 LB: > { %s32_s15 = sadd.s32 1, %s2157_s13  ;;  %p1623_p0 = scmp.ge.s32.totalorder %s2161_s14, 1  ;;  %s2161_s14 = sphi %s2187_s14, %s13_s14   ;;  %s2157_s13 = sphi %s2185_s13, %s2488_s13   ;;  %s2153_s12 = sphi %s2183_s12, %s2487_s12  }
   0x3   : > { %p34_p1 = scmp.ge.s32.totalorder %s32_s15, 2  ;;  %p191_p2 = scmp.lt.s32.totalorder %s2161_s14, 3 }
   0x5   : > { %s2490_s15 = smov (%p34_p1, %s32_s15), 0  ;;  %p192_p3 = pnand %p1623_p0, %p191_p2 }
   0x6   : > { %v2015_v0 = vld [vmem:[%s2484_s1 + $0x40] sm:$0xff] (!%p192_p3)   ;;  %v2019_v4 = vld [vmem:[%s2484_s1 + $0x48] sm:$0xff] (!%p192_p3)   ;;  %v2023_v8 = vld [vmem:[%s2484_s1 + $0x50] sm:$0xff] (!%p192_p3)   ;;  %s1624_s23 = sshll.u32 (!%p192_p3), %s2153_s12, 3 }
   0x7   : > { %195 = sbr.rel (%p192_p3) target bundleno = 330 (0x14a), region = 32  ;;  %v2016_v1 = vld [vmem:[%s2484_s1 + $0xc0] sm:$0xff] (!%p192_p3)   ;;  %1778 = vmatprep.subr.bf16.mxu0 (!%p192_p3), %v2015_v0  ;;  %v2020_v5 = vld [vmem:[%s2484_s1 + $0xc8] sm:$0xff] (!%p192_p3)   ;;  %v2024_v9 = vld [vmem:[%s2484_s1 + $0xd0] sm:$0xff] (!%p192_p3)   ;;  %p236_p4 = scmp.lt.s32.totalorder (!%p192_p3), %s1624_s23, 15 }
   0x8   : > { %v2017_v2 = vld [vmem:[%s2484_s1] sm:$0xff] (!%p192_p3)   ;;  %1818 = vmatprep.subr.bf16.mxu1 (!%p192_p3), %v2016_v1  ;;  %v2021_v6 = vld [vmem:[%s2484_s1 + $0x8] sm:$0xff] (!%p192_p3)   ;;  %v2025_v10 = vld [vmem:[%s2484_s1 + $0x10] sm:$0xff] (!%p192_p3)  }
   0x9   : > { %v2018_v3 = vld [vmem:[%s2484_s1 + $0x80] sm:$0xff] (!%p192_p3)   ;;  %1779 = vmatpush3.bf16.msra.mxu0 (!%p192_p3), %v2017_v2  ;;  %v2022_v7 = vld [vmem:[%s2484_s1 + $0x88] sm:$0xff] (!%p192_p3)   ;;  %v2026_v11 = vld [vmem:[%s2484_s1 + $0x90] sm:$0xff] (!%p192_p3)  }
   0xa   : > { %1819 = vmatpush3.bf16.msra.mxu1 (!%p192_p3), %v2018_v3  ;;  %1780 = vmatprep.subr.bf16.mxu0 (!%p192_p3), %v2019_v4  ;;  %v2027_v12 = vld [vmem:[%s2484_s1 + $0x58] sm:$0xff] (!%p192_p3)   ;;  %v2031_v16 = vld [vmem:[%s2484_s1 + $0x60] sm:$0xff] (!%p192_p3)   ;;  %v2035_v20 = vld [vmem:[%s2484_s1 + $0x68] sm:$0xff] (!%p192_p3)  }
   0xb   : > { %1820 = vmatprep.subr.bf16.mxu1 (!%p192_p3), %v2020_v5  ;;  %v2028_v13 = vld [vmem:[%s2484_s1 + $0xd8] sm:$0xff] (!%p192_p3)   ;;  %v2032_v17 = vld [vmem:[%s2484_s1 + $0xe0] sm:$0xff] (!%p192_p3)   ;;  %v2036_v21 = vld [vmem:[%s2484_s1 + $0xe8] sm:$0xff] (!%p192_p3)  }
   0xc   : > { %v2029_v14 = vld [vmem:[%s2484_s1 + $0x18] sm:$0xff] (!%p192_p3)   ;;  %v2033_v18 = vld [vmem:[%s2484_s1 + $0x20] sm:$0xff] (!%p192_p3)   ;;  %v2037_v22 = vld [vmem:[%s2484_s1 + $0x28] sm:$0xff] (!%p192_p3)  }
   0xd   : > { %1781 = vmatpush3.bf16.msra.mxu0 (!%p192_p3), %v2021_v6  ;;  %v2030_v15 = vld [vmem:[%s2484_s1 + $0x98] sm:$0xff] (!%p192_p3)   ;;  %v2034_v19 = vld [vmem:[%s2484_s1 + $0xa0] sm:$0xff] (!%p192_p3)   ;;  %v2038_v23 = vld [vmem:[%s2484_s1 + $0xa8] sm:$0xff] (!%p192_p3)  }
   0xe   : > { %1821 = vmatpush3.bf16.msra.mxu1 %v2022_v7  ;;  %1782 = vmatprep.subr.bf16.mxu0 %v2023_v8  ;;  %s2492_s23 = smov (!%p236_p4, %s1624_s23), 15  ;;  %v2039_v24 = vld [vmem:[%s2484_s1 + $0x70] sm:$0xff]   ;;  %v2043_v28 = vld [vmem:[%s2484_s1 + $0x78] sm:$0xff]   ;;  %v2053_v36 = vld [vmem:[%s2484_s1 + $0x140] sm:$0xff]  }
   0xf   : > { %1822 = vmatprep.subr.bf16.mxu1 %v2024_v9  ;;  %v2040_v25 = vld [vmem:[%s2484_s1 + $0xf0] sm:$0xff]   ;;  %s1990_s22 = smul.u32 36, %s2492_s23  ;;  %v2044_v29 = vld [vmem:[%s2484_s1 + $0xf8] sm:$0xff]   ;;  %v2054_v37 = vld [vmem:[%s2484_s1 + $0x1c0] sm:$0xff]   ;;  %s1627_s4 = sshll.u32 %s2492_s23, 2 }
  0x10   : > { %v2041_v26 = vld [vmem:[%s2484_s1 + $0x30] sm:$0xff]   ;;  %v2045_v30 = vld [vmem:[%s2484_s1 + $0x38] sm:$0xff]   ;;  %v2055_v38 = vld [vmem:[%s2484_s1 + $0x100] sm:$0xff]   ;;  %s265_s7 = scalar_lea.vmem %s2486_s3, %s1627_s4 }
  0x11   : > { %1783 = vmatpush3.bf16.msra.mxu0 %v2025_v10  ;;  %v2042_v27 = vld [vmem:[%s2484_s1 + $0xb0] sm:$0xff]   ;;  %s2300_s6 = scalar_lea.vmem %s2483_s0, %s1990_s22  ;;  %v2046_v31 = vld [vmem:[%s2484_s1 + $0xb8] sm:$0xff]   ;;  %v2056_v39 = vld [vmem:[%s2484_s1 + $0x180] sm:$0xff]  }
  0x12   : > { %1823 = vmatpush3.bf16.msra.mxu1 %v2026_v11  ;;  %1784 = vmatprep.subr.bf16.mxu0 %v2027_v12  ;;  %v2047_v32 = vld [vmem:[%s2300_s6] ss:$36 sps:$4 sm:$0xff]   ;;  %v2050_v34 = vld [vmem:[%s2300_s6 + $0x8] ss:$36 sps:$4 sm:$0xff]   ;;  %v2063_v45 = vld [vmem:[%s2300_s6 + $0x54] ss:$36 sps:$4 sm:$0xff]  }
  0x13   : > { %1824 = vmatprep.subr.bf16.mxu1 %v2028_v13  ;;  %v2049_v33 = vld [vmem:[%s2300_s6 + $0x4] ss:$36 sps:$4 sm:$0xff]   ;;  %v2052_v35 = vld [vmem:[%s2300_s6 + $0xc] ss:$36 sps:$4 sm:$0xff]   ;;  %v2071_v52 = vld [vmem:[%s2484_s1 + $0x158] sm:$0xff]  }
  0x14   : > { %1120 = vmatprep.mubr.bf16.mxu0 %v2049_v33  ;;  %1185 = vmatprep.mubr.bf16.mxu1 %v2052_v35  ;;  %v2057_v40 = vld [vmem:[%s2484_s1 + $0x148] sm:$0xff]   ;;  %v2066_v47 = vld [vmem:[%s2300_s6 + $0x50] ss:$36 sps:$4 sm:$0xff]   ;;  %v2072_v53 = vld [vmem:[%s2484_s1 + $0x1d8] sm:$0xff]  }
  0x15   : > { %1785 = vmatpush3.bf16.msra.mxu0 %v2029_v14  ;;  %v2058_v41 = vld [vmem:[%s2484_s1 + $0x1c8] sm:$0xff]   ;;  %v2067_v48 = vld [vmem:[%s2484_s1 + $0x150] sm:$0xff]   ;;  %v2073_v54 = vld [vmem:[%s2484_s1 + $0x118] sm:$0xff]  }
  0x16   : > { %1825 = vmatpush3.bf16.msra.mxu1 %v2030_v15  ;;  %1786 = vmatprep.subr.bf16.mxu0 %v2031_v16  ;;  %v2059_v42 = vld [vmem:[%s2484_s1 + $0x108] sm:$0xff]   ;;  %v2068_v49 = vld [vmem:[%s2484_s1 + $0x1d0] sm:$0xff]   ;;  %v2074_v55 = vld [vmem:[%s2484_s1 + $0x198] sm:$0xff]  }
  0x17   : > { %1826 = vmatprep.subr.bf16.mxu1 %v2032_v17  ;;  %v2060_v43 = vld [vmem:[%s2484_s1 + $0x188] sm:$0xff]   ;;  %v2069_v50 = vld [vmem:[%s2484_s1 + $0x110] sm:$0xff]   ;;  %v2077_v57 = vld [vmem:[%s2300_s6 + $0x9c] ss:$36 sps:$4 sm:$0xff]  }
  0x18   : > { %v2061_v44 = vld [vmem:[%s2300_s6 + $0x4c] ss:$36 sps:$4 sm:$0xff]   ;;  %v2075_v56 = vld [vmem:[%s2300_s6 + $0x94] ss:$36 sps:$4 sm:$0xff]   ;;  %v2081_v60 = vld [vmem:[%s2484_s1 + $0x160] sm:$0xff]  }
  0x19   : > { %1787 = vmatpush3.bf16.msra.mxu0 %v2033_v18  ;;  %v2065_v46 = vld [vmem:[%s2300_s6 + $0x48] ss:$36 sps:$4 sm:$0xff]   ;;  %v2070_v51 = vld [vmem:[%s2484_s1 + $0x190] sm:$0xff]   ;;  %v2080_v59 = vld [vmem:[%s2300_s6 + $0x98] ss:$36 sps:$4 sm:$0xff]  }
  0x1a   : > { %1827 = vmatpush3.bf16.msra.mxu1 %v2034_v19  ;;  %1788 = vmatprep.subr.bf16.mxu0 %v2035_v20  ;;  %v2079_v58 = vld [vmem:[%s2300_s6 + $0x90] ss:$36 sps:$4 sm:$0xff]   ;;  %v2082_v61 = vld [vmem:[%s2484_s1 + $0x1e0] sm:$0xff]   ;;  %v2085_v0 = vld [vmem:[%s2484_s1 + $0x168] sm:$0xff]  }
  0x1b   : > { %1828 = vmatprep.subr.bf16.mxu1 %v2036_v21  ;;  %v2083_v62 = vld [vmem:[%s2484_s1 + $0x120] sm:$0xff]   ;;  %v2086_v1 = vld [vmem:[%s2484_s1 + $0x1e8] sm:$0xff]   ;;  %v2093_v6 = vld [vmem:[%s2300_s6 + $0xd8] ss:$36 sps:$4 sm:$0xff]  }
  0x1c   : > { %v2084_v63 = vld [vmem:[%s2484_s1 + $0x1a0] sm:$0xff]   ;;  %v2087_v2 = vld [vmem:[%s2484_s1 + $0x128] sm:$0xff]   ;;  %v2095_v8 = vld [vmem:[%s2484_s1 + $0x170] sm:$0xff]  }
  0x1d   : > { %1789 = vmatpush3.bf16.msra.mxu0 %v2037_v22  ;;  %v2088_v3 = vld [vmem:[%s2484_s1 + $0x1a8] sm:$0xff]   ;;  %v2089_v4 = vld [vmem:[%s2300_s6 + $0xdc] ss:$36 sps:$4 sm:$0xff]   ;;  %v2096_v9 = vld [vmem:[%s2484_s1 + $0x1f0] sm:$0xff]  }
  0x1e   : > { %1829 = vmatpush3.bf16.msra.mxu1 %v2038_v23  ;;  %1790 = vmatprep.subr.bf16.mxu0 %v2039_v24  ;;  %v2091_v5 = vld [vmem:[%s2300_s6 + $0xe4] ss:$36 sps:$4 sm:$0xff]   ;;  %v2097_v10 = vld [vmem:[%s2484_s1 + $0x130] sm:$0xff]   ;;  %v2099_v12 = vld [vmem:[%s2484_s1 + $0x178] sm:$0xff]  }
  0x1f   : > { %1830 = vmatprep.subr.bf16.mxu1 %v2040_v25  ;;  %v2094_v7 = vld [vmem:[%s2300_s6 + $0xe0] ss:$36 sps:$4 sm:$0xff]   ;;  %v2098_v11 = vld [vmem:[%s2484_s1 + $0x1b0] sm:$0xff]   ;;  %v2100_v13 = vld [vmem:[%s2484_s1 + $0x1f8] sm:$0xff]  }
  0x20   : > { %v2101_v14 = vld [vmem:[%s2484_s1 + $0x138] sm:$0xff]   ;;  %v2103_v16 = vld [vmem:[%s2300_s6 + $0x10] ss:$36 sps:$4 sm:$0xff]   ;;  %v2109_v20 = vld [vmem:[%s2484_s1 + $0x200] sm:$0xff]  }
  0x21   : > { %1791 = vmatpush3.bf16.msra.mxu0 %v2041_v26  ;;  %v2102_v15 = vld [vmem:[%s2484_s1 + $0x1b8] sm:$0xff]   ;;  %v2110_v21 = vld [vmem:[%s2484_s1 + $0x208] sm:$0xff]   ;;  %v2116_v25 = vld [vmem:[%s2300_s6 + $0x60] ss:$36 sps:$4 sm:$0xff]  }
  0x22   : > { %1831 = vmatpush3.bf16.msra.mxu1 %v2042_v27  ;;  %1792 = vmatprep.subr.bf16.mxu0 %v2043_v28  ;;  %v2105_v17 = vld [vmem:[%s2300_s6 + $0x14] ss:$36 sps:$4 sm:$0xff]   ;;  %v2108_v19 = vld [vmem:[%s2300_s6 + $0x1c] ss:$36 sps:$4 sm:$0xff]   ;;  %v2113_v23 = vld [vmem:[%s2300_s6 + $0x64] ss:$36 sps:$4 sm:$0xff]  }
  0x23   : > { %1832 = vmatprep.subr.bf16.mxu1 %v2044_v29  ;;  %v2106_v18 = vld [vmem:[%s2300_s6 + $0x18] ss:$36 sps:$4 sm:$0xff]   ;;  %v2117_v26 = vld [vmem:[%s2484_s1 + $0x210] sm:$0xff]   ;;  %v2119_v27 = vld [vmem:[%s2300_s6 + $0xa4] ss:$36 sps:$4 sm:$0xff]  }
  0x24   : > { %v2111_v22 = vld [vmem:[%s2300_s6 + $0x5c] ss:$36 sps:$4 sm:$0xff]   ;;  %v2121_v28 = vld [vmem:[%s2300_s6 + $0xac] ss:$36 sps:$4 sm:$0xff]  }
  0x25   : > { %1793 = vmatpush3.bf16.msra.mxu0 %v2045_v30  ;;  %v2115_v24 = vld [vmem:[%s2300_s6 + $0x58] ss:$36 sps:$4 sm:$0xff]   ;;  %v2123_v30 = vld [vmem:[%s2300_s6 + $0xa0] ss:$36 sps:$4 sm:$0xff]   ;;  %v2127_v33 = vld [vmem:[%s2300_s6 + $0xec] ss:$36 sps:$4 sm:$0xff]  }
  0x26   : > { %1833 = vmatpush3.bf16.msra.mxu1 %v2046_v31  ;;  %1858 = vmatprep.subr.bf16.mxu0 %v2053_v36  ;;  %v2118_v29 = vld [vmem:[%s2484_s1 + $0x218] sm:$0xff]   ;;  %v2124_v31 = vld [vmem:[%s2300_s6 + $0xa8] ss:$36 sps:$4 sm:$0xff]  }
  0x27   : > { %1898 = vmatprep.subr.bf16.mxu1 %v2054_v37  ;;  %v2126_v35 = vld [vmem:[%s2484_s1 + $0x228] sm:$0xff]   ;;  %v2133_v37 = vld [vmem:[%s2484_s1 + $0x230] sm:$0xff]  }
  0x28   : > { %1121 = vmatmul.mubr.bf16.vlgmr.msra.gmra.mrb[0].mxu0 %v2047_v32  ;;  %v2125_v32 = vld [vmem:[%s2484_s1 + $0x220] sm:$0xff]   ;;  %v2131_v36 = vld [vmem:[%s2300_s6 + $0xe8] ss:$36 sps:$4 sm:$0xff]  }
  0x29   : > { %1186 = vmatmul.mubr.bf16.vlgmr.msra.gmra.mrb[0].mxu1 %v2050_v34  ;;  %1859 = vmatpush3.bf16.msra.mxu0 %v2055_v38  ;;  %v2129_v34 = vld [vmem:[%s2300_s6 + $0xf4] ss:$36 sps:$4 sm:$0xff]  }
  0x2a   : > { %1899 = vmatpush3.bf16.msra.mxu1 %v2056_v39  ;;  %1860 = vmatprep.subr.bf16.mxu0 %v2057_v40  ;;  %v2132_v38 = vld [vmem:[%s2300_s6 + $0xf0] ss:$36 sps:$4 sm:$0xff]   ;;  %v2135_v39 = vld [vmem:[%s2300_s6 + $0x20] ss:$36 sps:$4 sm:$0xff]  }
  0x2b   : > { %1900 = vmatprep.subr.bf16.mxu1 %v2058_v41  ;;  %1128 = vmatprep.mubr.bf16.mxu0 %v2061_v44  ;;  %v2136_v40 = vld [vmem:[%s2300_s6 + $0xb0] ss:$36 sps:$4 sm:$0xff]   ;;  %v2134_v41 = vld [vmem:[%s2484_s1 + $0x238] sm:$0xff]  }
  0x2c   : > { %1193 = vmatprep.mubr.bf16.mxu1 %v2063_v45 }
  0x2d   : > { %1861 = vmatpush3.bf16.msra.mxu0 %v2059_v42  ;;  %v2137_v42 = vld [vmem:[%s2300_s6 + $0x68] ss:$36 sps:$4 sm:$0xff]  }
  0x2e   : > { %1901 = vmatpush3.bf16.msra.mxu1 %v2060_v43  ;;  %1862 = vmatprep.subr.bf16.mxu0 %v2067_v48  ;;  %v2138_v43 = vld [vmem:[%s2300_s6 + $0xf8] ss:$36 sps:$4 sm:$0xff]  }
  0x2f   : > { %1902 = vmatprep.subr.bf16.mxu1 %v2068_v49 }
  0x30   : > { %1129 = vmatmul.mubr.bf16.gmra.mrb[4].mxu0 %v2065_v46 }
  0x31   : > { %1194 = vmatmul.mubr.bf16.gmra.mrb[4].mxu1 %v2066_v47  ;;  %1863 = vmatpush3.bf16.msra.mxu0 %v2069_v50 }
  0x32   : > { %1903 = vmatpush3.bf16.msra.mxu1 %v2070_v51  ;;  %1864 = vmatprep.subr.bf16.mxu0 %v2071_v52 }
  0x33   : > { %1904 = vmatprep.subr.bf16.mxu1 %v2072_v53  ;;  %1136 = vmatprep.mubr.bf16.mxu0 %v2075_v56 }
  0x34   : > { %1201 = vmatprep.mubr.bf16.mxu1 %v2077_v57 }
  0x35   : > { %1865 = vmatpush3.bf16.msra.mxu0 %v2073_v54 }
  0x36   : > { %1905 = vmatpush3.bf16.msra.mxu1 %v2074_v55  ;;  %1866 = vmatprep.subr.bf16.mxu0 %v2081_v60 }
  0x37   : > { %1906 = vmatprep.subr.bf16.mxu1 %v2082_v61 }
  0x38   : > { %1137 = vmatmul.mubr.bf16.gmra.mrb[8].mxu0 %v2079_v58 }
  0x39   : > { %1202 = vmatmul.mubr.bf16.gmra.mrb[8].mxu1 %v2080_v59  ;;  %1867 = vmatpush3.bf16.msra.mxu0 %v2083_v62 }
  0x3a   : > { %1907 = vmatpush3.bf16.msra.mxu1 %v2084_v63  ;;  %1868 = vmatprep.subr.bf16.mxu0 %v2085_v0 }
  0x3b   : > { %1908 = vmatprep.subr.bf16.mxu1 %v2086_v1  ;;  %1144 = vmatprep.mubr.bf16.mxu0 %v2089_v4 }
  0x3c   : > { %1209 = vmatprep.mubr.bf16.mxu1 %v2091_v5 }
  0x3d   : > { %1869 = vmatpush3.bf16.msra.mxu0 %v2087_v2 }
  0x3e   : > { %1909 = vmatpush3.bf16.msra.mxu1 %v2088_v3  ;;  %1870 = vmatprep.subr.bf16.mxu0 %v2095_v8 }
  0x3f   : > { %1910 = vmatprep.subr.bf16.mxu1 %v2096_v9 }
  0x40   : > { %1145 = vmatmul.mubr.bf16.gmra.mrb[12].mxu0 %v2093_v6 }
  0x41   : > { %1210 = vmatmul.mubr.bf16.gmra.mrb[12].mxu1 %v2094_v7  ;;  %1871 = vmatpush3.bf16.msra.mxu0 %v2097_v10 }
  0x42   : > { %1911 = vmatpush3.bf16.msra.mxu1 %v2098_v11  ;;  %1872 = vmatprep.subr.bf16.mxu0 %v2099_v12 }
  0x43   : > { %1912 = vmatprep.subr.bf16.mxu1 %v2100_v13  ;;  %1250 = vmatprep.mubr.bf16.mxu0 %v2105_v17 }
  0x44   : > { %1315 = vmatprep.mubr.bf16.mxu1 %v2108_v19 }
  0x45   : > { %1873 = vmatpush3.bf16.msra.mxu0 %v2101_v14 }
  0x46   : > { %1913 = vmatpush3.bf16.msra.mxu1 %v2102_v15  ;;  %1950 = vmatprep.subr.bf16.mxu0 %v2109_v20 }
  0x47   : > { %1974 = vmatprep.subr.bf16.mxu1 %v2109_v20 }
  0x48   : > { %1251 = vmatmul.mubr.bf16.vlgmr.msra.gmra.mrb[16].mxu0 %v2103_v16 }
  0x49   : > { %1316 = vmatmul.mubr.bf16.vlgmr.msra.gmra.mrb[16].mxu1 %v2106_v18  ;;  %1951 = vmatpush3.bf16.msra.mxu0 %v2109_v20 }
  0x4a   : > { %1982 = vmatpush3.bf16.msra.mxu1 %v2109_v20  ;;  %1952 = vmatprep.subr.bf16.mxu0 %v2110_v21 }
  0x4b   : > { %1975 = vmatprep.subr.bf16.mxu1 %v2110_v21  ;;  %1258 = vmatprep.mubr.bf16.mxu0 %v2111_v22 }
  0x4c   : > { %1323 = vmatprep.mubr.bf16.mxu1 %v2113_v23 }
  0x4d   : > { %1953 = vmatpush3.bf16.msra.mxu0 %v2110_v21 }
  0x4e   : > { %1983 = vmatpush3.bf16.msra.mxu1 %v2110_v21  ;;  %1954 = vmatprep.subr.bf16.mxu0 %v2117_v26 }
  0x4f   : > { %1976 = vmatprep.subr.bf16.mxu1 %v2117_v26 }
  0x50   : > { %1259 = vmatmul.mubr.bf16.gmra.mrb[20].mxu0 %v2115_v24 }
  0x51   : > { %1324 = vmatmul.mubr.bf16.gmra.mrb[20].mxu1 %v2116_v25  ;;  %1266 = vmatprep.mubr.bf16.mxu0 %v2119_v27 }
  0x52   : > { %1955 = vmatpush3.bf16.msra.mxu0 %v2117_v26  ;;  %1331 = vmatprep.mubr.bf16.mxu1 %v2121_v28 }
  0x53   : > { %1984 = vmatpush3.bf16.msra.mxu1 %v2117_v26  ;;  %1956 = vmatprep.subr.bf16.mxu0 %v2118_v29 }
  0x54   : > { %1977 = vmatprep.subr.bf16.mxu1 %v2118_v29 }
  0x56   : > { %1957 = vmatpush3.bf16.msra.mxu0 %v2118_v29 }
  0x57   : > { %1985 = vmatpush3.bf16.msra.mxu1 %v2118_v29  ;;  %1958 = vmatprep.subr.bf16.mxu0 %v2125_v32 }
  0x58   : > { %1267 = vmatmul.mubr.bf16.gmra.mrb[24].mxu0 %v2123_v30  ;;  %1978 = vmatprep.subr.bf16.mxu1 %v2125_v32 }
  0x59   : > { %1332 = vmatmul.mubr.bf16.gmra.mrb[24].mxu1 %v2124_v31  ;;  %1274 = vmatprep.mubr.bf16.mxu0 %v2127_v33 }
  0x5a   : > { %1959 = vmatpush3.bf16.msra.mxu0 %v2125_v32  ;;  %1339 = vmatprep.mubr.bf16.mxu1 %v2129_v34 }
  0x5b   : > { %1986 = vmatpush3.bf16.msra.mxu1 %v2125_v32  ;;  %1960 = vmatprep.subr.bf16.mxu0 %v2126_v35 }
  0x5c   : > { %1979 = vmatprep.subr.bf16.mxu1 %v2126_v35 }
  0x5e   : > { %1961 = vmatpush3.bf16.msra.mxu0 %v2126_v35 }
  0x5f   : > { %1987 = vmatpush3.bf16.msra.mxu1 %v2126_v35  ;;  %1962 = vmatprep.subr.bf16.mxu0 %v2133_v37 }
  0x60   : > { %1275 = vmatmul.mubr.bf16.gmra.mrb[28].mxu0 %v2131_v36  ;;  %1980 = vmatprep.subr.bf16.mxu1 %v2133_v37 }
  0x61   : > { %1340 = vmatmul.mubr.bf16.gmra.mrb[28].mxu1 %v2132_v38  ;;  %1966 = vmatprep.mubr.bf16.mxu0 %v2135_v39 }
  0x62   : > { %1963 = vmatpush3.bf16.msra.mxu0 %v2133_v37  ;;  %1970 = vmatprep.mubr.bf16.mxu1 %v2136_v40 }
  0x63   : > { %1988 = vmatpush3.bf16.msra.mxu1 %v2133_v37  ;;  %1964 = vmatprep.subr.bf16.mxu0 %v2134_v41 }
  0x64   : > { %1981 = vmatprep.subr.bf16.mxu1 %v2134_v41 }
  0x66   : > { %1965 = vmatpush3.bf16.msra.mxu0 %v2134_v41 }
  0x67   : > { %1989 = vmatpush3.bf16.msra.mxu1 %v2134_v41 }
  0x69   : > { %1967 = vmatmul.mubr.bf16.vlgmr.msra.gmra.mrb[32].mxu0 %v2137_v42 }
  0x6a   : > { %1971 = vmatmul.mubr.bf16.vlgmr.msra.gmra.mrb[32].mxu1 %v2138_v43 }
  0xfb   : > { %v1794_v44 = vpop.f32.mrb[0].mxu0 }
  0xfc   : > { %v1834_v45 = vpop.f32.mrb[0].mxu1  ;;  %v1795_v46 = vpop.f32.mrb[1].mxu0 }
  0xfd   : > { %v1796_v47 = vadd.f32 %v1795_v46, %v1794_v44  ;;  %v1835_v48 = vpop.f32.mrb[1].mxu1  ;;  %v1797_v49 = vpop.f32.mrb[2].mxu0 }
  0xfe   : > { %v1836_v50 = vadd.f32 %v1835_v48, %v1834_v45  ;;  %v1837_v51 = vpop.f32.mrb[2].mxu1  ;;  %v1798_v52 = vpop.f32.mrb[3].mxu0 }
  0xff   : > { %v1799_v53 = vadd.f32 %v1798_v52, %v1797_v49  ;;  %v1838_v54 = vpop.f32.mrb[3].mxu1 }
 0x100   : > { %v1188_v55 = vadd.f32 %v1836_v50, %v1796_v47  ;;  %v1839_v56 = vadd.f32 %v1838_v54, %v1837_v51 }
 0x102   : > { %v1191_v57 = vadd.f32 %v1839_v56, %v1799_v53 }
 0x103   : > { %v1800_v58 = vpop.f32.mrb[4].mxu0 }
 0x104   : > { %v1840_v59 = vpop.f32.mrb[4].mxu1  ;;  %v1801_v60 = vpop.f32.mrb[5].mxu0 }
 0x105   : > { %v1802_v61 = vadd.f32 %v1801_v60, %v1800_v58  ;;  %v1841_v62 = vpop.f32.mrb[5].mxu1  ;;  %v1803_v63 = vpop.f32.mrb[6].mxu0 }
 0x106   : > { %v1842_v0 = vadd.f32 %v1841_v62, %v1840_v59  ;;  %v1843_v1 = vpop.f32.mrb[6].mxu1  ;;  %v1804_v2 = vpop.f32.mrb[7].mxu0 }
 0x107   : > { %v1805_v3 = vadd.f32 %v1804_v2, %v1803_v63  ;;  %v1844_v4 = vpop.f32.mrb[7].mxu1 }
 0x108   : > { %v1196_v5 = vadd.f32 %v1842_v0, %v1802_v61  ;;  %v1845_v6 = vadd.f32 %v1844_v4, %v1843_v1 }
 0x10a   : > { %v1199_v7 = vadd.f32 %v1845_v6, %v1805_v3 }
 0x10b   : > { %v1806_v8 = vpop.f32.mrb[8].mxu0 }
 0x10c   : > { %v1846_v9 = vpop.f32.mrb[8].mxu1  ;;  %v1807_v10 = vpop.f32.mrb[9].mxu0 }
 0x10d   : > { %v1808_v11 = vadd.f32 %v1807_v10, %v1806_v8  ;;  %v1847_v12 = vpop.f32.mrb[9].mxu1  ;;  %v1809_v13 = vpop.f32.mrb[10].mxu0 }
 0x10e   : > { %v1848_v14 = vadd.f32 %v1847_v12, %v1846_v9  ;;  %v1849_v15 = vpop.f32.mrb[10].mxu1  ;;  %v1810_v16 = vpop.f32.mrb[11].mxu0 }
 0x10f   : > { %v1811_v17 = vadd.f32 %v1810_v16, %v1809_v13  ;;  %v1850_v18 = vpop.f32.mrb[11].mxu1 }
 0x110   : > { %v1204_v19 = vadd.f32 %v1848_v14, %v1808_v11  ;;  %v1851_v20 = vadd.f32 %v1850_v18, %v1849_v15 }
 0x112   : > { %v1207_v21 = vadd.f32 %v1851_v20, %v1811_v17 }
 0x113   : > { %v1812_v22 = vpop.f32.mrb[12].mxu0 }
 0x114   : > { %v1852_v23 = vpop.f32.mrb[12].mxu1  ;;  %v1813_v24 = vpop.f32.mrb[13].mxu0 }
 0x115   : > { %v1853_v25 = vpop.f32.mrb[13].mxu1  ;;  %v1814_v26 = vadd.f32 %v1813_v24, %v1812_v22  ;;  %v1815_v28 = vpop.f32.mrb[14].mxu0 }
 0x116   : > { %v1854_v27 = vadd.f32 %v1853_v25, %v1852_v23  ;;  %v1855_v29 = vpop.f32.mrb[14].mxu1  ;;  %v1816_v30 = vpop.f32.mrb[15].mxu0 }
 0x117   : > { %v1856_v31 = vpop.f32.mrb[15].mxu1  ;;  %v1817_v33 = vadd.f32 %v1816_v30, %v1815_v28 }
 0x118   : > { %v1212_v32 = vadd.f32 %v1854_v27, %v1814_v26  ;;  %v1857_v34 = vadd.f32 %v1856_v31, %v1855_v29 }
 0x11a   : > { %v1215_v35 = vadd.f32 %v1857_v34, %v1817_v33 }
 0x11b   : > { %v1874_v36 = vpop.f32.mrb[16].mxu0 }
 0x11c   : > { %v1875_v37 = vpop.f32.mrb[17].mxu0  ;;  %v1914_v38 = vpop.f32.mrb[16].mxu1 }
 0x11d   : > { %v1876_v39 = vadd.f32 %v1875_v37, %v1874_v36  ;;  %v1877_v40 = vpop.f32.mrb[18].mxu0  ;;  %v1915_v41 = vpop.f32.mrb[17].mxu1 }
 0x11e   : > { %v1878_v42 = vpop.f32.mrb[19].mxu0  ;;  %v1916_v44 = vadd.f32 %v1915_v41, %v1914_v38  ;;  %v1917_v45 = vpop.f32.mrb[18].mxu1 }
 0x11f   : > { %v1253_v43 = vadd.f32 %v1876_v39, %v1188_v55  ;;  %v1879_v46 = vadd.f32 %v1878_v42, %v1877_v40  ;;  %v1918_v47 = vpop.f32.mrb[19].mxu1  ;;  %v1736_v39 = vld [vmem:[%s2485_s2] ss:$0 sm:$0xff] }
 0x120   : > { %v1919_v49 = vadd.f32 %v1918_v47, %v1917_v45 }
 0x121   : > { %v1256_v48 = vadd.f32 %v1879_v46, %v1191_v57  ;;  %v1318_v50 = vadd.f32 %v1916_v44, %v1253_v43 }
 0x123   : > { %v1880_v51 = vpop.f32.mrb[20].mxu0  ;;  %v2464_v52 = vadd.f32 %v1919_v49, %v1256_v48 }
 0x124   : > { %v1881_v53 = vpop.f32.mrb[21].mxu0  ;;  %v1920_v54 = vpop.f32.mrb[20].mxu1 }
 0x125   : > { %v1882_v56 = vadd.f32 %v1881_v53, %v1880_v51  ;;  %v1883_v58 = vpop.f32.mrb[22].mxu0  ;;  %v1921_v59 = vpop.f32.mrb[21].mxu1 }
 0x126   : > { %v1884_v60 = vpop.f32.mrb[23].mxu0  ;;  %v1922_v62 = vadd.f32 %v1921_v59, %v1920_v54  ;;  %v1923_v63 = vpop.f32.mrb[22].mxu1 }
 0x127   : > { %v1261_v61 = vadd.f32 %v1882_v56, %v1196_v5  ;;  %v1885_v55 = vadd.f32 %v1884_v60, %v1883_v58  ;;  %v1924_v0 = vpop.f32.mrb[23].mxu1 }
 0x128   : > { %v1925_v2 = vadd.f32 %v1924_v0, %v1923_v63 }
 0x129   : > { %v1264_v1 = vadd.f32 %v1885_v55, %v1199_v7  ;;  %v1326_v3 = vadd.f32 %v1922_v62, %v1261_v61 }
 0x12b   : > { %v1886_v57 = vpop.f32.mrb[24].mxu0  ;;  %v1329_v4 = vadd.f32 %v1925_v2, %v1264_v1 }
 0x12c   : > { %v1887_v6 = vpop.f32.mrb[25].mxu0  ;;  %v1926_v8 = vpop.f32.mrb[24].mxu1 }
 0x12d   : > { %v1888_v9 = vadd.f32 %v1887_v6, %v1886_v57  ;;  %v1889_v10 = vpop.f32.mrb[26].mxu0  ;;  %v1927_v11 = vpop.f32.mrb[25].mxu1 }
 0x12e   : > { %v1890_v12 = vpop.f32.mrb[27].mxu0  ;;  %v1928_v14 = vadd.f32 %v1927_v11, %v1926_v8  ;;  %v1929_v15 = vpop.f32.mrb[26].mxu1 }
 0x12f   : > { %v1269_v13 = vadd.f32 %v1888_v9, %v1204_v19  ;;  %v1891_v16 = vadd.f32 %v1890_v12, %v1889_v10  ;;  %v1930_v5 = vpop.f32.mrb[27].mxu1 }
 0x130   : > { %v1931_v18 = vadd.f32 %v1930_v5, %v1929_v15 }
 0x131   : > { %v1272_v17 = vadd.f32 %v1891_v16, %v1207_v21  ;;  %v1334_v20 = vadd.f32 %v1928_v14, %v1269_v13 }
 0x133   : > { %v1892_v22 = vpop.f32.mrb[28].mxu0  ;;  %v1337_v7 = vadd.f32 %v1931_v18, %v1272_v17 }
 0x134   : > { %v1893_v23 = vpop.f32.mrb[29].mxu0  ;;  %v1932_v24 = vpop.f32.mrb[28].mxu1 }
 0x135   : > { %v1894_v25 = vadd.f32 %v1893_v23, %v1892_v22  ;;  %v1895_v26 = vpop.f32.mrb[30].mxu0  ;;  %v1933_v27 = vpop.f32.mrb[29].mxu1 }
 0x136   : > { %v1896_v28 = vpop.f32.mrb[31].mxu0  ;;  %v1934_v30 = vadd.f32 %v1933_v27, %v1932_v24  ;;  %v1935_v31 = vpop.f32.mrb[30].mxu1 }
 0x137   : > { %v1277_v29 = vadd.f32 %v1894_v25, %v1212_v32  ;;  %v1897_v33 = vadd.f32 %v1896_v28, %v1895_v26  ;;  %v1936_v19 = vpop.f32.mrb[31].mxu1 }
 0x138   : > { %v1937_v36 = vadd.f32 %v1936_v19, %v1935_v31 }
 0x139   : > { %v1280_v34 = vadd.f32 %v1897_v33, %v1215_v35  ;;  %v1342_v37 = vadd.f32 %v1934_v30, %v1277_v29 }
 0x13b   : > { %v1345_v38 = vadd.f32 %v1937_v36, %v1280_v34 }
 0x13c   : > { %v1968_v21 = vpop.f32.mrb[32].mxu0 }
 0x13d   : > { %v1391_v40 = vadd.f32 %v1968_v21, %v1326_v3  ;;  %v1972_v41 = vpop.f32.mrb[32].mxu1  ;;  %v1382_v42 = vpop.f32.mrb[33].mxu0 }
 0x13e   : > { %v1407_v43 = vadd.f32 %v1972_v41, %v1342_v37  ;;  %v1383_v44 = vadd.f32 %v1382_v42, %v1318_v50  ;;  %v1398_v32 = vpop.f32.mrb[33].mxu1  ;;  %v1969_v45 = vpop.f32.mrb[34].mxu0 }
 0x13f   : > { %v1449_v46 = vadd.f32 %v1736_v39, %v1391_v40  ;;  %v1399_v47 = vadd.f32 %v1398_v32, %v1334_v20  ;;  %v1394_v48 = vadd.f32 %v1969_v45, %v1329_v4  ;;  %v1973_v35 = vpop.f32.mrb[34].mxu1  ;;  %v1385_v49 = vpop.f32.mrb[35].mxu0 }
 0x140   : > { %v1453_v51 = vadd.f32 %v1736_v39, %v1407_v43  ;;  %v1447_v53 = vadd.f32 %v1736_v39, %v1383_v44  ;;  %v1410_v54 = vadd.f32 %v1973_v35, %v1345_v38  ;;  %v1386_v56 = vadd.f32 %v1385_v49, %v2464_v52  ;;  %v1401_v58 = vpop.f32.mrb[35].mxu1 }
 0x141   : > { %v1451_v59 = vadd.f32 %v1736_v39, %v1399_v47  ;;  %v1450_v60 = vadd.f32 %v1736_v39, %v1394_v48  ;;  %v1402_v61 = vadd.f32 %v1401_v58, %v1337_v7  ;;  %v1457_v50 = vmax.f32 %v1449_v46, 0.0 }
 0x142   : > { %v1454_v62 = vadd.f32 %v1736_v39, %v1410_v54  ;;  %v1448_v63 = vadd.f32 %v1736_v39, %v1386_v56  ;;  %v1461_v1 = vmax.f32 %v1453_v51, 0.0  ;;  %v1455_v2 = vmax.f32 %v1447_v53, 0.0 }
 0x143   : > { %v1458_v55 = vmax.f32 %v1450_v60, 0.0  ;;  %v1452_v0 = vadd.f32 %v1736_v39, %v1402_v61  ;;  %v1459_v4 = vmax.f32 %v1451_v59, 0.0 }
 0x144   : > { %v1462_v3 = vmax.f32 %v1454_v62, 0.0  ;;  %v1456_v57 = vmax.f32 %v1448_v63, 0.0 }
 0x145   : > { %v1763_v52 = vpack.c.bf16 %v1458_v55, %v1457_v50  ;;  %v1460_v6 = vmax.f32 %v1452_v0, 0.0 }
 0x146   : > { %v1773_v8 = vpack.c.bf16 %v1462_v3, %v1461_v1  ;;  %v1758_v9 = vpack.c.bf16 %v1456_v57, %v1455_v2 }
 0x147   : > { %1775 = vst [vmem:[%s265_s7 + $0x8] sm:$0xff] %v1763_v52   ;;  %v1768_v10 = vpack.c.bf16 %v1460_v6, %v1459_v4 }
 0x148   : > { %1777 = vst [vmem:[%s265_s7 + $0x18] sm:$0xff] %v1773_v8   ;;  %1759 = vst [vmem:[%s265_s7] sm:$0xff] %v1758_v9  }
 0x149   : > { %1776 = vst [vmem:[%s265_s7 + $0x10] sm:$0xff] %v1768_v10  }
 0x14a PF: > { %s13_s14 = sadd.s32 1, %s2161_s14   ;;  %s2487_s12 = smov %s2157_s13 }
 0x14b   : > { %p10_p5 = scmp.ge.s32.totalorder %s13_s14, 4   ;;  %s2488_s13 = smov %s2490_s15 }
 0x14d   :  { %12 = sbr.rel (!%p10_p5) target bundleno = 2 (0x2), region = 76 }

// kernel: fwd.11
= control target key start
LH: loop header
LB: loop body
LE: loop exit
PB: predicated region body
PF: predicated region fallthrough
CT: control target
= control target key end

     0   :  { %9 = vsyncpa [#allocation4], 0  ;;  %s1153_s0 = inlined_call_operand.vmem [shape: bf16[128,128], index: 0, kind: input, shape index: {}]   ;;  %s1154_s1 = inlined_call_operand.vmem [shape: bf16[128,128], index: 1, kind: input, shape index: {}]   ;;  %s1155_s2 = inlined_call_operand.vmem [shape: f32[1,128], index: 2, kind: input, shape index: {}]   ;;  %s1156_s3 = inlined_call_operand.vmem [shape: bf16[128,128], index: 3, kind: input, shape index: {}]   ;;  %s1157_s4 = inlined_call_operand.hbm [shape: f32[128,128], index: 4, kind: output, shape index: {}]  }
   0x1   :  { %11 = vsyncpa [#allocation4 + $0x1], 0  ;;  %s992_s15 = smov 0   ;;  %s994_s16 = smov 0  }
   0x2   :  { %s996_s17 = smov 0   ;;  %s998_s18 = smov 0  }
   0x3   :  { %s1000_s19 = smov 0   ;;  %s1002_s20 = smov 0  }
   0x4 LB: > { %s713_s21 = sadd.s32 4294967295, %s962_s20   ;;  %s714_s22 = sadd.s32 4294967294, %s962_s20   ;;  %s962_s20 = sphi %s1002_s20, %s17_s20   ;;  %s958_s19 = sphi %s1000_s19, %s1164_s19   ;;  %s954_s18 = sphi %s998_s18, %s1163_s18   ;;  %s950_s17 = sphi %s996_s17, %s1162_s17   ;;  %s946_s16 = sphi %s994_s16, %s1161_s16   ;;  %s942_s15 = sphi %s992_s15, %s1160_s15  }
   0x5   : > { %s36_s23 = sadd.s32 1, %s958_s19  ;;  %s155_s24 = sadd.s32 1, %s950_s17 }
   0x6   : > { %p38_p0 = scmp.ge.s32.totalorder %s36_s23, 2  ;;  %p165_p1 = scmp.ne.s32.totalorder %s950_s17, %s946_s16 }
   0x7   : > { %p166_p2 = scmp.eq.s32.totalorder %s713_s21, 1  ;;  %p171_p3 = scmp.ne.s32.totalorder %s946_s16, %s942_s15 }
   0x8   : > { %s1166_s23 = smov (%p38_p0, %s36_s23), 0  ;;  %p172_p5 = scmp.eq.s32.totalorder %s714_s22, 1 }
   0x9   : > { %p1032_p4 = por %p166_p2, %p165_p1  ;;  %s150_s26 = ssub.s32 %s958_s19, %s1166_s23 }
   0xa   : > { %p719_p6 = scmp.ge.s32.totalorder %s962_s20, 1  ;;  %p153_p7 = scmp.eq.s32.totalorder %s150_s26, 0 }
   0xb   : > { %p1039_p8 = por %p172_p5, %p171_p3  ;;  %p232_p9 = scmp.lt.s32.totalorder %s962_s20, 3 }
   0xc   : > { %s1045_s28 = scalar_select %p153_p7, %s950_s17, %s155_s24  }
   0xd   : > { %p233_p10 = pnand %p719_p6, %p232_p9 }
   0xe   : > { %v872_v0 = vld [vmem:[%s1154_s1] sm:$0xff] (!%p233_p10)   ;;  %s721_s5 = sshll.u32 (!%p233_p10), %s954_s18, 3  ;;  %v873_v1 = vld [vmem:[%s1154_s1 + $0x8] sm:$0xff] (!%p233_p10)   ;;  %v874_v2 = vld [vmem:[%s1154_s1 + $0x10] sm:$0xff] (!%p233_p10)   ;;  %s277_s14 = sand.u32 (!%p233_p10), 1, %s946_s16  }
   0xf   : > { %236 = sbr.rel (%p233_p10) target bundleno = 283 (0x11b), region = 36  ;;  %p281_p11 = scmp.lt.s32.totalorder (!%p233_p10), %s721_s5, 15  ;;  %775 = vmatprep.subr.bf16.mxu0 (!%p233_p10), %v872_v0  ;;  %799 = vmatprep.subr.bf16.mxu1 (!%p233_p10), %v872_v0  ;;  %v875_v3 = vld [vmem:[%s1154_s1 + $0x18] sm:$0xff] (!%p233_p10)   ;;  %v876_v6 = vld [vmem:[%s1154_s1 + $0x20] sm:$0xff] (!%p233_p10)   ;;  %v877_v7 = vld [vmem:[%s1154_s1 + $0x28] sm:$0xff] (!%p233_p10)  }
  0x10   : > { %776 = vmatpush3.bf16.msra.mxu0 (!%p233_p10), %v872_v0  ;;  %807 = vmatpush3.bf16.msra.mxu1 (!%p233_p10), %v872_v0  ;;  %v878_v8 = vld [vmem:[%s1154_s1 + $0x30] sm:$0xff] (!%p233_p10)   ;;  %v879_v9 = vld [vmem:[%s1154_s1 + $0x38] sm:$0xff] (!%p233_p10)   ;;  %v737_v16 = vld [vmem:[%s1155_s2] ss:$0 sm:$0xff] (!%p233_p10)  ;;  %s1107_s30 = scalar_lea.sflag (!%p233_p10), [#allocation4], %s277_s14  ;;  %s964_s7 = smov (!%p233_p10), [#allocation3]  }
  0x11   : > { %777 = vmatprep.subr.bf16.mxu0 (!%p233_p10), %v873_v1  ;;  %800 = vmatprep.subr.bf16.mxu1 (!%p233_p10), %v873_v1  ;;  %s888_s8 = sshll.u32 (!%p233_p10), %s964_s7, 4  ;;  %s889_s8 = int_to_ptr.vmem [resolvable:$false] %s888_s8 }
  0x12   : > { %s890_s9 = scalar_lea.vmem (!%p233_p10), %s889_s8, 2048 }
  0x14   : > { %778 = vmatpush3.bf16.msra.mxu0 (!%p233_p10), %v873_v1  ;;  %808 = vmatpush3.bf16.msra.mxu1 (!%p233_p10), %v873_v1 }
  0x15   : > { %779 = vmatprep.subr.bf16.mxu0 (!%p233_p10), %v874_v2  ;;  %801 = vmatprep.subr.bf16.mxu1 (!%p233_p10), %v874_v2 }
  0x16   : > { %s1168_s5 = smov (!%p281_p11, %s721_s5), 15 }
  0x17   : > { %s722_s10 = sshll.u32 %s1168_s5, 2  ;;  %s743_s5 = sshll.u32 %s954_s18, 10 }
  0x18   : > { %s1065_s13 = scalar_lea.vmem %s1153_s0, %s722_s10  ;;  %780 = vmatpush3.bf16.msra.mxu0 %v874_v2  ;;  %809 = vmatpush3.bf16.msra.mxu1 %v874_v2  ;;  %s308_s12 = scalar_lea.vmem %s1156_s3, %s722_s10 }
  0x19   : > { %v880_v4 = vld [vmem:[%s1065_s13] sm:$0xff]   ;;  %v881_v5 = vld [vmem:[%s1065_s13 + $0x10] sm:$0xff]   ;;  %781 = vmatprep.subr.bf16.mxu0 %v875_v3  ;;  %802 = vmatprep.subr.bf16.mxu1 %v875_v3  ;;  %v882_v10 = vld [vmem:[%s1065_s13 + $0x8] sm:$0xff]   ;;  %s1101_s18 = scalar_lea.hbm %s1157_s4, %s743_s5 }
  0x1a   : > { %791 = vmatprep.mubr.bf16.mxu0 %v880_v4  ;;  %795 = vmatprep.mubr.bf16.mxu1 %v881_v5  ;;  %v883_v11 = vld [vmem:[%s1065_s13 + $0x18] sm:$0xff]   ;;  %v760_v12 = vld [vmem:[%s308_s12 + $0x8] sm:$0xff]   ;;  %v745_v14 = vld [vmem:[%s308_s12] sm:$0xff]   ;;  %s720_s13 = sshll.u32 %s277_s14, 6 }
  0x1b   : > { %v762_v13 = vld [vmem:[%s308_s12 + $0x18] sm:$0xff]   ;;  %v761_v15 = vld [vmem:[%s308_s12 + $0x10] sm:$0xff]   ;;  %v750_v17 = vunpack.c.l.bf16 %v760_v12  ;;  %v746_v21 = vunpack.c.l.bf16 %v745_v14  ;;  %v751_v27 = vunpack.c.h.bf16 %v760_v12  ;;  %v747_v33 = vunpack.c.h.bf16 %v745_v14  ;;  %s279_s10 = scalar_lea.vmem [#allocation3], %s720_s13 }
  0x1c   : > { %782 = vmatpush3.bf16.msra.mxu0 %v875_v3  ;;  %810 = vmatpush3.bf16.msra.mxu1 %v875_v3  ;;  %v758_v18 = vunpack.c.l.bf16 %v762_v13  ;;  %v754_v22 = vunpack.c.l.bf16 %v761_v15  ;;  %v759_v28 = vunpack.c.h.bf16 %v762_v13  ;;  %v755_v34 = vunpack.c.h.bf16 %v761_v15  ;;  %s590_s24 = sshll.u32 %s279_s10, 4  ;;  %s1103_s24 = int_to_ptr.vmem [resolvable:$true] %s590_s24 }
  0x1d   : > { %783 = vmatprep.subr.bf16.mxu0 %v876_v6  ;;  %803 = vmatprep.subr.bf16.mxu1 %v876_v6  ;;  %s884_s6 = scalar_lea.vmem %s1103_s24, 1024  ;;  %p891_p1 = scmp.lt.s32.totalorder %s1103_s24, %s889_s8 }
  0x1e   : > { %p885_p12 = scmp.ne.s32.totalorder %s1103_s24, %s884_s6  ;;  %p892_p2 = scmp.lt.s32.totalorder %s890_s9, %s884_s6 }
  0x20   : > { %784 = vmatpush3.bf16.msra.mxu0 %v876_v6  ;;  %811 = vmatpush3.bf16.msra.mxu1 %v876_v6  ;;  %p886_p13 = pnand %p885_p12, %p1032_p4  ;;  %p893_p3 = por %p892_p2, %p891_p1 }
  0x21   : > { %785 = vmatprep.subr.bf16.mxu0 %v877_v7  ;;  %804 = vmatprep.subr.bf16.mxu1 %v877_v7 }
  0x22   : > { %p887_p0 = pneg %p886_p13 }
  0x24   : > { %786 = vmatpush3.bf16.msra.mxu0 %v877_v7  ;;  %812 = vmatpush3.bf16.msra.mxu1 %v877_v7  ;;  %p894_p5 = pnand %p893_p3, %p887_p0 }
  0x25   : > { %787 = vmatprep.subr.bf16.mxu0 %v878_v8  ;;  %805 = vmatprep.subr.bf16.mxu1 %v878_v8 }
  0x28   : > { %788 = vmatpush3.bf16.msra.mxu0 %v878_v8  ;;  %813 = vmatpush3.bf16.msra.mxu1 %v878_v8 }
  0x29   : > { %789 = vmatprep.subr.bf16.mxu0 %v879_v9  ;;  %806 = vmatprep.subr.bf16.mxu1 %v879_v9 }
  0x2c   : > { %790 = vmatpush3.bf16.msra.mxu0 %v879_v9  ;;  %814 = vmatpush3.bf16.msra.mxu1 %v879_v9 }
  0x2f   : > { %792 = vmatmul.mubr.bf16.vlgmr.msra.gmra.mrb[0].mxu0 %v882_v10  ;;  %796 = vmatmul.mubr.bf16.vlgmr.msra.gmra.mrb[0].mxu1 %v883_v11 }
 0x102   : > { %v793_v19 = vpop.f32.mrb[0].mxu0  ;;  %v797_v20 = vpop.f32.mrb[0].mxu1 }
 0x103   : > { %v529_v23 = vadd.f32 %v793_v19, %v737_v16  ;;  %v533_v24 = vadd.f32 %v797_v20, %v737_v16  ;;  %v462_v25 = vpop.f32.mrb[1].mxu0  ;;  %v478_v26 = vpop.f32.mrb[1].mxu1 }
 0x104   : > { %v527_v29 = vadd.f32 %v737_v16, %v462_v25  ;;  %v531_v30 = vadd.f32 %v737_v16, %v478_v26  ;;  %v794_v31 = vpop.f32.mrb[2].mxu0  ;;  %v798_v32 = vpop.f32.mrb[2].mxu1 }
 0x105   : > { %v553_v35 = vadd.f32 %v750_v17, %v529_v23  ;;  %v557_v36 = vadd.f32 %v758_v18, %v533_v24  ;;  %v530_v37 = vadd.f32 %v794_v31, %v737_v16  ;;  %v534_v38 = vadd.f32 %v798_v32, %v737_v16  ;;  %v465_v39 = vpop.f32.mrb[3].mxu0  ;;  %v481_v40 = vpop.f32.mrb[3].mxu1 }
 0x106   : > { %v551_v41 = vadd.f32 %v746_v21, %v527_v29  ;;  %v555_v42 = vadd.f32 %v754_v22, %v531_v30  ;;  %v528_v43 = vadd.f32 %v737_v16, %v465_v39  ;;  %v532_v44 = vadd.f32 %v737_v16, %v481_v40 }
 0x107   : > { %v561_v45 = vmax.f32 %v553_v35, 0.0  ;;  %v565_v46 = vmax.f32 %v557_v36, 0.0  ;;  %v554_v47 = vadd.f32 %v751_v27, %v530_v37  ;;  %v558_v48 = vadd.f32 %v759_v28, %v534_v38 }
 0x108   : > { %v559_v49 = vmax.f32 %v551_v41, 0.0  ;;  %v563_v50 = vmax.f32 %v555_v42, 0.0  ;;  %v552_v51 = vadd.f32 %v747_v33, %v528_v43  ;;  %v556_v52 = vadd.f32 %v755_v34, %v532_v44 }
 0x109   : > { %569 = vst [vmem:[%s279_s10 + $0x10] sm:$0xff] %v561_v45  ;;  %573 = vst [vmem:[%s279_s10 + $0x30] sm:$0xff] %v565_v46  ;;  %v562_v53 = vmax.f32 %v554_v47, 0.0  ;;  %v566_v54 = vmax.f32 %v558_v48, 0.0 }
 0x10a   : > { %567 = vst [vmem:[%s279_s10] sm:$0xff] %v559_v49  ;;  %571 = vst [vmem:[%s279_s10 + $0x20] sm:$0xff] %v563_v50  ;;  %v560_v55 = vmax.f32 %v552_v51, 0.0  ;;  %v564_v56 = vmax.f32 %v556_v52, 0.0 }
 0x10b   : > { %570 = vst [vmem:[%s279_s10 + $0x18] sm:$0xff] %v562_v53  ;;  %574 = vst [vmem:[%s279_s10 + $0x38] sm:$0xff] %v566_v54 }
 0x10c   : > { %568 = vst [vmem:[%s279_s10 + $0x8] sm:$0xff] %v560_v55  ;;  %572 = vst [vmem:[%s279_s10 + $0x28] sm:$0xff] %v564_v56 }
 0x10d   : > { %897 = shalt.err (!%p894_p5)
}
 0x10e   : > { %s898_s11 = scalar_lea.hbm %s1101_s18, 1024  ;;  %s902_s21 = scalar_lea.hbm %s1157_s4, 2048 }
 0x10f   : > { %p899_p6 = scmp.ne.s32.totalorder %s1101_s18, %s898_s11  ;;  %p903_p10 = scmp.lt.u32.totalorder %s1101_s18, %s1157_s4 }
 0x110   : > { %p904_p11 = scmp.lt.u32.totalorder %s902_s21, %s898_s11  ;;  %p906_p13 = scmp.lt.u32.totalorder %s898_s11, %s1101_s18 }
 0x111   : > { %p900_p7 = pnand %p899_p6, %p1032_p4 }
 0x112   : > { %p905_p12 = por %p904_p11, %p903_p10 }
 0x113   : > { %p901_p9 = pneg %p900_p7 }
 0x114   : > { %p907_p0 = por %p906_p13, %p905_p12 }
 0x116   : > { %p908_p1 = pnand %p907_p0, %p901_p9 }
 0x118   : > { %911 = shalt.err (!%p908_p1)
}
 0x119   : > { %s965_s5 = smov 128   ;;  %s966_s10 = smov 8  }
 0x11a   : > { %815 = dma.vmem_to_hbm [thread:$0]  (%p1032_p4), %s1103_s24, 1024, %s1101_s18, %s1107_s30, %s965_s5, %s965_s5, %s966_s10  }
 0x11b PF: > { %p821_p2 = scmp.ge.s32.totalorder %s962_s20, 2  ;;  %s605_s26 = sand.u32 1, %s942_s15  }
 0x11c   : > { %s606_s29 = scalar_lea.sflag [#allocation4], %s605_s26 }
 0x11d   : > { %p818_p3 = pnand %p821_p2, %p1039_p8 }
 0x11f   : > { %937 = dma.done.wait (!%p818_p3), %s606_s29, 1024  }
 0x120   : > { %939 = vsyncadd (!%p818_p3), %s606_s29, 4294966272  ;;  %s17_s20 = sadd.s32 1, %s962_s20   ;;  %s1160_s15 = smov %s946_s16 }
 0x121   : > { %p14_p5 = scmp.ge.s32.totalorder %s17_s20, 4   ;;  %s1161_s16 = smov %s950_s17 }
 0x122   : > { %s1162_s17 = smov %s1045_s28  ;;  %s1163_s18 = smov %s958_s19 }
 0x123   : > { %s1164_s19 = smov %s1166_s23  ;;  %16 = sbr.rel (!%p14_p5) target bundleno = 4 (0x4), region = 88 }
 0x12a   :  { %611 = vsyncpa [#allocation4], 1 }
 0x12b   :  { %613 = vsyncpa [#allocation4 + $0x1], 1 }

</bundles_post_ra>
